<compile_context>
chip_gen: v5e
topology: v5e:2x2
jax: 0.10.0
libtpu: 0.0.40
codegen_flags: <defaults>
</compile_context>

<pallas_src>
from functools import partial
from math import sqrt

import jax
import jax.numpy as jnp
from jax.experimental import pallas as pl
from jax.experimental.pallas import tpu as pltpu

HIDDEN_LAYER = 256
LOG_STD_MAX = 2.0
LOG_STD_MIN = -20.0
LANE = 128


def _round_up(x, m):
    return ((x + m - 1) // m) * m


def _pnetwork_kernel(
    x_ref,
    # shared FCFF(dim_obs, 256)
    sw1_ref, sb1_ref, sw2_ref, sb2_ref, sw3_ref, sb3_ref,
    # fused [cont_heads layer-1 | padded discrete heads]: (256, 256 + d_pad)
    wh_ref, bh_ref,
    # cont_heads tail: Linear -> ReLU -> Linear (output padded to c_pad lanes)
    cw2_ref, cb2_ref, cw3_ref, cb3_ref,
    # lane-dense output slab: [logits (d_pad) | mean,lstd-unclamped (c_pad)]
    out_ref,
    *, d_pad,
):
    bf16 = jnp.bfloat16
    x = x_ref[...]  # already bf16: cast fused into the wrapper-side concat

    # --- shared trunk: Linear -> ReLU -> Linear -> ReLU -> Linear ---
    h = jnp.dot(x, sw1_ref[...], preferred_element_type=jnp.float32) + sb1_ref[...]
    h = jnp.maximum(h, 0.0).astype(bf16)
    h = jnp.dot(h, sw2_ref[...], preferred_element_type=jnp.float32) + sb2_ref[...]
    h = jnp.maximum(h, 0.0).astype(bf16)
    h = jnp.dot(h, sw3_ref[...], preferred_element_type=jnp.float32) + sb3_ref[...]
    h = h.astype(bf16)

    # --- one fused MXU pass for [cont-head L1 | all (padded) discrete heads] ---
    z = jnp.dot(h, wh_ref[...], preferred_element_type=jnp.float32) + bh_ref[...]
    c = jnp.maximum(z[:, :HIDDEN_LAYER], 0.0).astype(bf16)   # lane-aligned split

    # direct, 128-aligned store of the padded logits block (no concatenate)
    out_ref[:, :d_pad] = z[:, HIDDEN_LAYER:]

    # --- cont_heads tail: Linear -> ReLU -> Linear ---
    c = jnp.dot(c, cw2_ref[...], preferred_element_type=jnp.float32) + cb2_ref[...]
    c = jnp.maximum(c, 0.0).astype(bf16)
    out_c = jnp.dot(c, cw3_ref[...], preferred_element_type=jnp.float32) + cb3_ref[...]

    # direct, 128-aligned store of the padded [mean | lstd] block
    out_ref[:, d_pad:] = out_c


def _pick_tb(batch, default_tb=1024):
    """Adaptive batch tile: latency path for tiny batches, grid>=2 for big ones."""
    if batch <= LANE:
        return max(8, _round_up(batch, 8))            # small-batch / latency path
    b_lane = _round_up(batch, LANE)
    tb = min(default_tb, b_lane)
    # keep the grid >= 2 steps so both v7x TensorCores get work when possible
    if b_lane // tb < 2 and b_lane >= 2 * LANE:
        tb = _round_up(b_lane // 2, LANE)
    return tb


def pnetwork_forward(x, params, n_discrete, dim_cont, *, default_tb=1024):
    """x: (B, dim_obs). Returns (list of logits, mean, lstd)."""
    B, dim_obs = x.shape
    H = HIDDEN_LAYER
    sum_nd = int(sum(n_discrete))
    d_pad = _round_up(max(sum_nd, 1), LANE)       # padded discrete-logit lanes
    c_pad = _round_up(2 * dim_cont, LANE)         # padded [mean|lstd] lanes
    n_out = d_pad + c_pad                         # lane-dense slab width

    # bf16 input stream (no-op if the caller already fused the cast into concat)
    x = x.astype(jnp.bfloat16)

    tb = _pick_tb(B, default_tb)
    Bp = pl.cdiv(B, tb) * tb
    if Bp != B:
        x = jnp.pad(x, ((0, Bp - B), (0, 0)))
    grid = (Bp // tb,)

    weights = [
        params["sw1"], params["sb1"], params["sw2"], params["sb2"],
        params["sw3"], params["sb3"],
        params["wh"], params["bh"],
        params["cw2"], params["cb2"], params["cw3"], params["cb3"],
    ]

    x_spec = pl.BlockSpec((tb, dim_obs), lambda i: (i, 0))
    # constant index_map + single-buffered -> each weight/bias is DMA'd once
    # and stays VMEM-resident across all grid steps.
    w_specs = [
        pl.BlockSpec(w.shape, lambda i: (0, 0), pipeline_mode=pl.Buffered(1))
        for w in weights
    ]
    out_spec = pl.BlockSpec((tb, n_out), lambda i: (i, 0))

    flops = 2 * Bp * (dim_obs * H + 2 * H * H + H * (H + d_pad)
                      + H * H + H * c_pad)
    bytes_accessed = (sum(int(w.size) * w.dtype.itemsize for w in weights)
                      + Bp * dim_obs * x.dtype.itemsize + Bp * n_out * 4)

    slab = pl.pallas_call(
        partial(_pnetwork_kernel, d_pad=d_pad),
        out_shape=jax.ShapeDtypeStruct((Bp, n_out), jnp.float32),
        grid=grid,
        in_specs=[x_spec] + w_specs,
        out_specs=out_spec,
        compiler_params=pltpu.CompilerParams(
            dimension_semantics=("parallel",)),
        cost_estimate=pl.CostEstimate(
            flops=flops, transcendentals=0, bytes_accessed=bytes_accessed),
    )(x, *weights)

    slab = slab[:B]

    # glue: slice valid lanes out of the padded slab, chunk + clamp
    logits_all = slab[:, :sum_nd]
    mean = slab[:, d_pad:d_pad + dim_cont]
    lstd = jnp.clip(slab[:, d_pad + dim_cont:d_pad + 2 * dim_cont],
                    LOG_STD_MIN, LOG_STD_MAX)

    logits_d = []
    off = 0
    for n in n_discrete:
        logits_d.append(logits_all[:, off:off + n])
        off += n
    return logits_d, mean, lstd


def _xavier_uniform(key, fan_in, fan_out):
    bound = sqrt(6.0 / (fan_in + fan_out))
    # stored as (in, out) so the kernel computes x @ W (matches nn.Linear W.T)
    return jax.random.uniform(
        key, (fan_in, fan_out), dtype=jnp.float32, minval=-bound, maxval=bound
    )


def init_params(key, dim_obs, n_discrete, dim_cont, hidden=HIDDEN_LAYER):
    keys = jax.random.split(key, 7)
    sum_nd = int(sum(n_discrete))
    d_pad = _round_up(max(sum_nd, 1), LANE)
    c_pad = _round_up(2 * dim_cont, LANE)
    bf16 = jnp.bfloat16

    sw1 = _xavier_uniform(keys[0], dim_obs, hidden)
    sw2 = _xavier_uniform(keys[1], hidden, hidden)
    sw3 = _xavier_uniform(keys[2], hidden, hidden)
    cw1 = _xavier_uniform(keys[3], hidden, hidden)
    cw2 = _xavier_uniform(keys[4], hidden, hidden)
    cw3 = _xavier_uniform(keys[5], hidden, 2 * dim_cont)

    # Discrete heads (synthetic xavier init), fused with cw1 into one matmul
    # and zero-padded to d_pad columns so the output slab is lane-dense.
    head_keys = jax.random.split(keys[6], len(n_discrete))
    wd = jnp.concatenate(
        [_xavier_uniform(hk, hidden, n) for hk, n in zip(head_keys, n_discrete)],
        axis=-1,
    )
    wd_padded = jnp.zeros((hidden, d_pad), jnp.float32).at[:, :sum_nd].set(wd)
    cw3_padded = jnp.zeros((hidden, c_pad), jnp.float32).at[:, :2 * dim_cont].set(cw3)

    # bf16 weights (halves weight DMA bytes; MXU accumulates in f32), f32 biases.
    # Padded columns are exactly zero; the wrapper never reads the padded lanes.
    return {
        "sw1": sw1.astype(bf16), "sb1": jnp.zeros((1, hidden), jnp.float32),
        "sw2": sw2.astype(bf16), "sb2": jnp.zeros((1, hidden), jnp.float32),
        "sw3": sw3.astype(bf16), "sb3": jnp.zeros((1, hidden), jnp.float32),
        "wh": jnp.concatenate([cw1, wd_padded], axis=-1).astype(bf16),
        "bh": jnp.zeros((1, hidden + d_pad), jnp.float32),
        "cw2": cw2.astype(bf16), "cb2": jnp.zeros((1, hidden), jnp.float32),
        "cw3": cw3_padded.astype(bf16), "cb3": jnp.zeros((1, c_pad), jnp.float32),
    }


def _reference_forward(x, params, n_discrete, dim_cont):
    """Pure-JAX reference mirroring the kernel's mixed-precision recipe."""
    bf16 = jnp.bfloat16

    def lin(a, w, b):
        return jnp.dot(a.astype(bf16), w, preferred_element_type=jnp.float32) + b

    H = HIDDEN_LAYER
    sum_nd = int(sum(n_discrete))
    h = jnp.maximum(lin(x, params["sw1"], params["sb1"]), 0.0)
    h = jnp.maximum(lin(h, params["sw2"], params["sb2"]), 0.0)
    h = lin(h, params["sw3"], params["sb3"])
    z = lin(h, params["wh"], params["bh"])
    logits_all = z[:, H:H + sum_nd]
    c = jnp.maximum(z[:, :H], 0.0)
    c = jnp.maximum(lin(c, params["cw2"], params["cb2"]), 0.0)
    out = lin(c, params["cw3"], params["cb3"])
    mean = out[:, :dim_cont]
    lstd = jnp.clip(out[:, dim_cont:2 * dim_cont], LOG_STD_MIN, LOG_STD_MAX)
    logits_d = []
    off = 0
    for n in n_discrete:
        logits_d.append(logits_all[:, off:off + n])
        off += n
    return logits_d, mean, lstd


def _check(x, params, n_discrete, dim_cont):
    B = x.shape[0]
    logits_d, mean, lstd = pnetwork_forward(x, params, n_discrete, dim_cont)
    jax.block_until_ready((logits_d, mean, lstd))

    assert [l.shape for l in logits_d] == [(B, n) for n in n_discrete]
    assert mean.shape == (B, dim_cont) and lstd.shape == (B, dim_cont)
    assert bool(jnp.all(lstd >= LOG_STD_MIN)) and bool(jnp.all(lstd <= LOG_STD_MAX))

    ref_logits, ref_mean, ref_lstd = _reference_forward(x, params, n_discrete, dim_cont)
    for got, ref in zip(logits_d, ref_logits):
        assert bool(jnp.allclose(got, ref, atol=2e-2, rtol=2e-2))
    assert bool(jnp.allclose(mean, ref_mean, atol=2e-2, rtol=2e-2))
    assert bool(jnp.allclose(lstd, ref_lstd, atol=2e-2, rtol=2e-2))


if __name__ == "__main__":
    # Small synthetic sizes consistent with the module:
    #   obs_self: 8 features, each encoder (tanks/polygons/bullets): 8 features
    #   -> dim_obs = 32 ; discrete action dims nvec = [3, 5, 2] ; dim_cont = 2
    D_SELF, D_TANK, D_POLY, D_BULLET = 8, 8, 8, 8
    DIM_OBS = D_SELF + D_TANK + D_POLY + D_BULLET
    N_DISCRETE = (3, 5, 2)
    DIM_CONT = 2

    root = jax.random.PRNGKey(0)
    k_obs, k_params, k_big = jax.random.split(root, 3)
    params = init_params(k_params, DIM_OBS, N_DISCRETE, DIM_CONT)

    # --- small batch (latency / single-step path) ---
    B = 4
    ko = jax.random.split(k_obs, 4)
    obs_self = jax.random.normal(ko[0], (B, D_SELF), jnp.float32)
    obs_tank = jax.random.normal(ko[1], (B, D_TANK), jnp.float32)      # stands in for te(...)
    obs_poly = jax.random.normal(ko[2], (B, D_POLY), jnp.float32)      # stands in for pe(...)
    obs_bullet = jax.random.normal(ko[3], (B, D_BULLET), jnp.float32)  # stands in for be(...)
    # glue: concat along feature axis (torch.cat(..., dim=-1)), cast fused in
    x_small = jnp.concatenate(
        [obs_self, obs_tank, obs_poly, obs_bullet], axis=-1).astype(jnp.bfloat16)
    _check(x_small, params, N_DISCRETE, DIM_CONT)

    # --- larger batch (exercises batch padding + multi-step parallel grid) ---
    B2 = 300
    x_large = jax.random.normal(k_big, (B2, DIM_OBS), jnp.float32).astype(jnp.bfloat16)
    _check(x_large, params, N_DISCRETE, DIM_CONT)

    print("KERNEL_OK")
</pallas_src>

<mosaic_0001>
module attributes {stable_mosaic.version = 11 : i64} {
  func.func @_pnetwork_kernel(%arg0: i32, %arg1: memref<8x32xbf16, #tpu.memory_space<vmem>>, %arg2: memref<32x256xbf16, #tpu.memory_space<vmem>>, %arg3: memref<1x256xf32, #tpu.memory_space<vmem>>, %arg4: memref<256x256xbf16, #tpu.memory_space<vmem>>, %arg5: memref<1x256xf32, #tpu.memory_space<vmem>>, %arg6: memref<256x256xbf16, #tpu.memory_space<vmem>>, %arg7: memref<1x256xf32, #tpu.memory_space<vmem>>, %arg8: memref<256x384xbf16, #tpu.memory_space<vmem>>, %arg9: memref<1x384xf32, #tpu.memory_space<vmem>>, %arg10: memref<256x256xbf16, #tpu.memory_space<vmem>>, %arg11: memref<1x256xf32, #tpu.memory_space<vmem>>, %arg12: memref<256x128xbf16, #tpu.memory_space<vmem>>, %arg13: memref<1x128xf32, #tpu.memory_space<vmem>>, %arg14: memref<8x256xf32, #tpu.memory_space<vmem>>) attributes {dimension_semantics = [#tpu.dimension_semantics<parallel>], iteration_bounds = array<i64: 1>, scalar_prefetch = 0 : i64, scratch_operands = 0 : i64, tpu.core_type = #tpu.core_type<tc>, window_params = [{transform_indices = @transform_0, window_bounds = array<i64: 8, 32>}, {pipeline_mode = #tpu.pipeline_mode<synchronous>, transform_indices = @transform_1, window_bounds = array<i64: 32, 256>}, {pipeline_mode = #tpu.pipeline_mode<synchronous>, transform_indices = @transform_2, window_bounds = array<i64: 1, 256>}, {pipeline_mode = #tpu.pipeline_mode<synchronous>, transform_indices = @transform_3, window_bounds = array<i64: 256, 256>}, {pipeline_mode = #tpu.pipeline_mode<synchronous>, transform_indices = @transform_4, window_bounds = array<i64: 1, 256>}, {pipeline_mode = #tpu.pipeline_mode<synchronous>, transform_indices = @transform_5, window_bounds = array<i64: 256, 256>}, {pipeline_mode = #tpu.pipeline_mode<synchronous>, transform_indices = @transform_6, window_bounds = array<i64: 1, 256>}, {pipeline_mode = #tpu.pipeline_mode<synchronous>, transform_indices = @transform_7, window_bounds = array<i64: 256, 384>}, {pipeline_mode = #tpu.pipeline_mode<synchronous>, transform_indices = @transform_8, window_bounds = array<i64: 1, 384>}, {pipeline_mode = #tpu.pipeline_mode<synchronous>, transform_indices = @transform_9, window_bounds = array<i64: 256, 256>}, {pipeline_mode = #tpu.pipeline_mode<synchronous>, transform_indices = @transform_10, window_bounds = array<i64: 1, 256>}, {pipeline_mode = #tpu.pipeline_mode<synchronous>, transform_indices = @transform_11, window_bounds = array<i64: 256, 128>}, {pipeline_mode = #tpu.pipeline_mode<synchronous>, transform_indices = @transform_12, window_bounds = array<i64: 1, 128>}, {transform_indices = @transform_13, window_bounds = array<i64: 8, 256>}]} {
    %c0 = arith.constant 0 : index
    %c0_0 = arith.constant 0 : index
    %0 = vector.load %arg1[%c0, %c0_0] : memref<8x32xbf16, #tpu.memory_space<vmem>>, vector<8x32xbf16>
    %c0_1 = arith.constant 0 : index
    %c0_2 = arith.constant 0 : index
    %1 = vector.load %arg2[%c0_1, %c0_2] : memref<32x256xbf16, #tpu.memory_space<vmem>>, vector<32x256xbf16>
    %cst = arith.constant dense<0.000000e+00> : vector<8x256xf32>
    %2 = tpu.matmul %0, %1, %cst {dimension_numbers = #tpu.dot_dimension_numbers<[1], [0], [0], [1], [0, 0, 1, 1], [], []>} : vector<8x32xbf16>, vector<32x256xbf16>, vector<8x256xf32> -> vector<8x256xf32>
    %c0_3 = arith.constant 0 : index
    %c0_4 = arith.constant 0 : index
    %3 = vector.load %arg3[%c0_3, %c0_4] : memref<1x256xf32, #tpu.memory_space<vmem>>, vector<1x256xf32>
    %4 = vector.broadcast %3 : vector<1x256xf32> to vector<8x256xf32>
    %5 = arith.addf %2, %4 : vector<8x256xf32>
    %cst_5 = arith.constant 0.000000e+00 : f32
    %6 = vector.broadcast %cst_5 : f32 to vector<8x256xf32>
    %7 = arith.maximumf %5, %6 : vector<8x256xf32>
    %8 = arith.truncf %7 : vector<8x256xf32> to vector<8x256xbf16>
    %c0_6 = arith.constant 0 : index
    %c0_7 = arith.constant 0 : index
    %9 = vector.load %arg4[%c0_6, %c0_7] : memref<256x256xbf16, #tpu.memory_space<vmem>>, vector<256x256xbf16>
    %cst_8 = arith.constant dense<0.000000e+00> : vector<8x256xf32>
    %10 = tpu.matmul %8, %9, %cst_8 {dimension_numbers = #tpu.dot_dimension_numbers<[1], [0], [0], [1], [0, 0, 1, 1], [], []>} : vector<8x256xbf16>, vector<256x256xbf16>, vector<8x256xf32> -> vector<8x256xf32>
    %c0_9 = arith.constant 0 : index
    %c0_10 = arith.constant 0 : index
    %11 = vector.load %arg5[%c0_9, %c0_10] : memref<1x256xf32, #tpu.memory_space<vmem>>, vector<1x256xf32>
    %12 = vector.broadcast %11 : vector<1x256xf32> to vector<8x256xf32>
    %13 = arith.addf %10, %12 : vector<8x256xf32>
    %cst_11 = arith.constant 0.000000e+00 : f32
    %14 = vector.broadcast %cst_11 : f32 to vector<8x256xf32>
    %15 = arith.maximumf %13, %14 : vector<8x256xf32>
    %16 = arith.truncf %15 : vector<8x256xf32> to vector<8x256xbf16>
    %c0_12 = arith.constant 0 : index
    %c0_13 = arith.constant 0 : index
    %17 = vector.load %arg6[%c0_12, %c0_13] : memref<256x256xbf16, #tpu.memory_space<vmem>>, vector<256x256xbf16>
    %cst_14 = arith.constant dense<0.000000e+00> : vector<8x256xf32>
    %18 = tpu.matmul %16, %17, %cst_14 {dimension_numbers = #tpu.dot_dimension_numbers<[1], [0], [0], [1], [0, 0, 1, 1], [], []>} : vector<8x256xbf16>, vector<256x256xbf16>, vector<8x256xf32> -> vector<8x256xf32>
    %c0_15 = arith.constant 0 : index
    %c0_16 = arith.constant 0 : index
    %19 = vector.load %arg7[%c0_15, %c0_16] : memref<1x256xf32, #tpu.memory_space<vmem>>, vector<1x256xf32>
    %20 = vector.broadcast %19 : vector<1x256xf32> to vector<8x256xf32>
    %21 = arith.addf %18, %20 : vector<8x256xf32>
    %22 = arith.truncf %21 : vector<8x256xf32> to vector<8x256xbf16>
    %c0_17 = arith.constant 0 : index
    %c0_18 = arith.constant 0 : index
    %23 = vector.load %arg8[%c0_17, %c0_18] : memref<256x384xbf16, #tpu.memory_space<vmem>>, vector<256x384xbf16>
    %cst_19 = arith.constant dense<0.000000e+00> : vector<8x384xf32>
    %24 = tpu.matmul %22, %23, %cst_19 {dimension_numbers = #tpu.dot_dimension_numbers<[1], [0], [0], [1], [0, 0, 1, 1], [], []>} : vector<8x256xbf16>, vector<256x384xbf16>, vector<8x384xf32> -> vector<8x384xf32>
    %c0_20 = arith.constant 0 : index
    %c0_21 = arith.constant 0 : index
    %25 = vector.load %arg9[%c0_20, %c0_21] : memref<1x384xf32, #tpu.memory_space<vmem>>, vector<1x384xf32>
    %26 = vector.broadcast %25 : vector<1x384xf32> to vector<8x384xf32>
    %27 = arith.addf %24, %26 : vector<8x384xf32>
    %28 = vector.extract_strided_slice %27 {offsets = [0, 0], sizes = [8, 256], strides = [1, 1]} : vector<8x384xf32> to vector<8x256xf32>
    %cst_22 = arith.constant 0.000000e+00 : f32
    %29 = vector.broadcast %cst_22 : f32 to vector<8x256xf32>
    %30 = arith.maximumf %28, %29 : vector<8x256xf32>
    %31 = arith.truncf %30 : vector<8x256xf32> to vector<8x256xbf16>
    %32 = vector.extract_strided_slice %27 {offsets = [0, 256], sizes = [8, 128], strides = [1, 1]} : vector<8x384xf32> to vector<8x128xf32>
    %c0_23 = arith.constant 0 : index
    %c0_24 = arith.constant 0 : index
    %33 = vector.load %arg14[%c0_23, %c0_24] : memref<8x256xf32, #tpu.memory_space<vmem>>, vector<8x128xf32>
    tpu.vector_store %arg14[%c0_23, %c0_24], %32 {strides = array<i32>} : memref<8x256xf32, #tpu.memory_space<vmem>>, vector<8x128xf32>,
    %c0_25 = arith.constant 0 : index
    %c0_26 = arith.constant 0 : index
    %34 = vector.load %arg10[%c0_25, %c0_26] : memref<256x256xbf16, #tpu.memory_space<vmem>>, vector<256x256xbf16>
    %cst_27 = arith.constant dense<0.000000e+00> : vector<8x256xf32>
    %35 = tpu.matmul %31, %34, %cst_27 {dimension_numbers = #tpu.dot_dimension_numbers<[1], [0], [0], [1], [0, 0, 1, 1], [], []>} : vector<8x256xbf16>, vector<256x256xbf16>, vector<8x256xf32> -> vector<8x256xf32>
    %c0_28 = arith.constant 0 : index
    %c0_29 = arith.constant 0 : index
    %36 = vector.load %arg11[%c0_28, %c0_29] : memref<1x256xf32, #tpu.memory_space<vmem>>, vector<1x256xf32>
    %37 = vector.broadcast %36 : vector<1x256xf32> to vector<8x256xf32>
    %38 = arith.addf %35, %37 : vector<8x256xf32>
    %cst_30 = arith.constant 0.000000e+00 : f32
    %39 = vector.broadcast %cst_30 : f32 to vector<8x256xf32>
    %40 = arith.maximumf %38, %39 : vector<8x256xf32>
    %41 = arith.truncf %40 : vector<8x256xf32> to vector<8x256xbf16>
    %c0_31 = arith.constant 0 : index
    %c0_32 = arith.constant 0 : index
    %42 = vector.load %arg12[%c0_31, %c0_32] : memref<256x128xbf16, #tpu.memory_space<vmem>>, vector<256x128xbf16>
    %cst_33 = arith.constant dense<0.000000e+00> : vector<8x128xf32>
    %43 = tpu.matmul %41, %42, %cst_33 {dimension_numbers = #tpu.dot_dimension_numbers<[1], [0], [0], [1], [0, 0, 1, 1], [], []>} : vector<8x256xbf16>, vector<256x128xbf16>, vector<8x128xf32> -> vector<8x128xf32>
    %c0_34 = arith.constant 0 : index
    %c0_35 = arith.constant 0 : index
    %44 = vector.load %arg13[%c0_34, %c0_35] : memref<1x128xf32, #tpu.memory_space<vmem>>, vector<1x128xf32>
    %45 = vector.broadcast %44 : vector<1x128xf32> to vector<8x128xf32>
    %46 = arith.addf %43, %45 : vector<8x128xf32>
    %c0_36 = arith.constant 0 : index
    %c128 = arith.constant 128 : index
    %47 = vector.load %arg14[%c0_36, %c128] : memref<8x256xf32, #tpu.memory_space<vmem>>, vector<8x128xf32>
    tpu.vector_store %arg14[%c0_36, %c128], %46 {strides = array<i32>} : memref<8x256xf32, #tpu.memory_space<vmem>>, vector<8x128xf32>,
    return
  }
  func.func @transform_0(%arg0: i32) -> (i32, i32) {
    %c0_i32 = arith.constant 0 : i32
    %c0_i32_0 = arith.constant 0 : i32
    return %arg0, %c0_i32 : i32, i32
  }
  func.func @transform_1(%arg0: i32) -> (i32, i32) {
    %c0_i32 = arith.constant 0 : i32
    %c0_i32_0 = arith.constant 0 : i32
    %c0_i32_1 = arith.constant 0 : i32
    return %c0_i32, %c0_i32_0 : i32, i32
  }
  func.func @transform_2(%arg0: i32) -> (i32, i32) {
    %c0_i32 = arith.constant 0 : i32
    %c0_i32_0 = arith.constant 0 : i32
    %c0_i32_1 = arith.constant 0 : i32
    return %c0_i32, %c0_i32_0 : i32, i32
  }
  func.func @transform_3(%arg0: i32) -> (i32, i32) {
    %c0_i32 = arith.constant 0 : i32
    %c0_i32_0 = arith.constant 0 : i32
    %c0_i32_1 = arith.constant 0 : i32
    return %c0_i32, %c0_i32_0 : i32, i32
  }
  func.func @transform_4(%arg0: i32) -> (i32, i32) {
    %c0_i32 = arith.constant 0 : i32
    %c0_i32_0 = arith.constant 0 : i32
    %c0_i32_1 = arith.constant 0 : i32
    return %c0_i32, %c0_i32_0 : i32, i32
  }
  func.func @transform_5(%arg0: i32) -> (i32, i32) {
    %c0_i32 = arith.constant 0 : i32
    %c0_i32_0 = arith.constant 0 : i32
    %c0_i32_1 = arith.constant 0 : i32
    return %c0_i32, %c0_i32_0 : i32, i32
  }
  func.func @transform_6(%arg0: i32) -> (i32, i32) {
    %c0_i32 = arith.constant 0 : i32
    %c0_i32_0 = arith.constant 0 : i32
    %c0_i32_1 = arith.constant 0 : i32
    return %c0_i32, %c0_i32_0 : i32, i32
  }
  func.func @transform_7(%arg0: i32) -> (i32, i32) {
    %c0_i32 = arith.constant 0 : i32
    %c0_i32_0 = arith.constant 0 : i32
    %c0_i32_1 = arith.constant 0 : i32
    return %c0_i32, %c0_i32_0 : i32, i32
  }
  func.func @transform_8(%arg0: i32) -> (i32, i32) {
    %c0_i32 = arith.constant 0 : i32
    %c0_i32_0 = arith.constant 0 : i32
    %c0_i32_1 = arith.constant 0 : i32
    return %c0_i32, %c0_i32_0 : i32, i32
  }
  func.func @transform_9(%arg0: i32) -> (i32, i32) {
    %c0_i32 = arith.constant 0 : i32
    %c0_i32_0 = arith.constant 0 : i32
    %c0_i32_1 = arith.constant 0 : i32
    return %c0_i32, %c0_i32_0 : i32, i32
  }
  func.func @transform_10(%arg0: i32) -> (i32, i32) {
    %c0_i32 = arith.constant 0 : i32
    %c0_i32_0 = arith.constant 0 : i32
    %c0_i32_1 = arith.constant 0 : i32
    return %c0_i32, %c0_i32_0 : i32, i32
  }
  func.func @transform_11(%arg0: i32) -> (i32, i32) {
    %c0_i32 = arith.constant 0 : i32
    %c0_i32_0 = arith.constant 0 : i32
    %c0_i32_1 = arith.constant 0 : i32
    return %c0_i32, %c0_i32_0 : i32, i32
  }
  func.func @transform_12(%arg0: i32) -> (i32, i32) {
    %c0_i32 = arith.constant 0 : i32
    %c0_i32_0 = arith.constant 0 : i32
    %c0_i32_1 = arith.constant 0 : i32
    return %c0_i32, %c0_i32_0 : i32, i32
  }
  func.func @transform_13(%arg0: i32) -> (i32, i32) {
    %c0_i32 = arith.constant 0 : i32
    %c0_i32_0 = arith.constant 0 : i32
    return %arg0, %c0_i32 : i32, i32
  }
}

</mosaic_0001>

<bundles_post_ra>
// kernel: tpu_custom_call.1
= control target key start
LH: loop header
LB: loop body
LE: loop exit
PB: predicated region body
PF: predicated region fallthrough
CT: control target
= control target key end

     0   :  { %18 = vsyncpa [#allocation3], 0  ;;  %s2829_s0 = inlined_call_operand.hbm [shape: bf16[8,32], index: 0, kind: input, shape index: {}]   ;;  %s2830_s1 = inlined_call_operand.hbm [shape: bf16[32,256], index: 1, kind: input, shape index: {}]   ;;  %s2831_s2 = inlined_call_operand.hbm [shape: f32[1,256], index: 2, kind: input, shape index: {}]   ;;  %s2832_s3 = inlined_call_operand.hbm [shape: bf16[256,256], index: 3, kind: input, shape index: {}]   ;;  %s2833_s4 = inlined_call_operand.vmem [shape: f32[1,256], index: 4, kind: input, shape index: {}]   ;;  %s2834_s5 = inlined_call_operand.hbm [shape: bf16[256,256], index: 5, kind: input, shape index: {}]   ;;  %s2835_s6 = inlined_call_operand.hbm [shape: f32[1,256], index: 6, kind: input, shape index: {}]   ;;  %s2836_s7 = inlined_call_operand.hbm [shape: bf16[256,384], index: 7, kind: input, shape index: {}]   ;;  %s2837_s8 = inlined_call_operand.vmem [shape: f32[1,384], index: 8, kind: input, shape index: {}]   ;;  %s2838_s9 = inlined_call_operand.hbm [shape: bf16[256,256], index: 9, kind: input, shape index: {}]   ;;  %s2839_s10 = inlined_call_operand.vmem [shape: f32[1,256], index: 10, kind: input, shape index: {}]   ;;  %s2840_s11 = inlined_call_operand.hbm [shape: bf16[256,128], index: 11, kind: input, shape index: {}]   ;;  %s2841_s12 = inlined_call_operand.vmem [shape: f32[1,128], index: 12, kind: input, shape index: {}]   ;;  %s2842_s13 = inlined_call_operand.hbm [shape: f32[8,256], index: 13, kind: output, shape index: {}]  }
   0x1   :  { %19 = vsyncpa [#allocation6], 0 }
   0x2   :  { %20 = vsyncpa [#allocation9], 0 }
   0x3   :  { %21 = vsyncpa [#allocation12], 0 }
   0x4   :  { %22 = vsyncpa [#allocation15], 0  ;;  %s39_s27 = sshll.u32 %s2830_s1, 4  ;;  %s40_s27 = int_to_ptr.hbm [resolvable:$true] %s39_s27 }
   0x5   :  { %23 = vsyncpa [#allocation4], 0  ;;  %s2687_s28 = smov [#allocation5]   ;;  %s63_s15 = sshll.u32 %s2832_s3, 4  ;;  %s64_s15 = int_to_ptr.hbm [resolvable:$true] %s63_s15 }
   0x6   :  { %s41_s29 = sshll.u32 %s2687_s28, 4  ;;  %s2688_s16 = smov 128   ;;  %s42_s29 = int_to_ptr.vmem [resolvable:$true] %s41_s29 }
   0x7   :  { %s2689_s17 = smov 8   ;;  %s2690_s18 = smov [#allocation8]  }
   0x8   :  { %47 = dma.hbm_to_vmem [thread:$0]  %s40_s27, 512, %s42_s29, [#allocation6], %s2688_s16, %s2688_s16, %s2689_s17  }
   0x9   :  { %s65_s19 = sshll.u32 %s2690_s18, 4  ;;  %s92_s21 = sshll.u32 %s2835_s6, 4  ;;  %s66_s19 = int_to_ptr.vmem [resolvable:$true] %s65_s19  ;;  %s93_s21 = int_to_ptr.hbm [resolvable:$true] %s92_s21 }
   0xa   :  { %71 = dma.hbm_to_vmem [thread:$0]  %s64_s15, 4096, %s66_s19, [#allocation9], %s2688_s16, %s2688_s16, %s2689_s17  }
   0xb   :  { %s117_s23 = sshll.u32 %s2838_s9, 4  ;;  %s2691_s24 = smov [#allocation11]   ;;  %s118_s23 = int_to_ptr.hbm [resolvable:$true] %s117_s23 }
   0xc   :  { %s94_s25 = sshll.u32 %s2691_s24, 4  ;;  %s2692_s26 = smov [#allocation14]   ;;  %s95_s25 = int_to_ptr.vmem [resolvable:$true] %s94_s25 }
   0xd   :  { %97 = dma.hbm_to_vmem [thread:$0]  %s93_s21, 32, %s95_s25, [#allocation12]  }
   0xe   :  { %s119_s27 = sshll.u32 %s2692_s26, 4  ;;  %s29_s6 = sshll.u32 %s2829_s0, 4  ;;  %s120_s27 = int_to_ptr.vmem [resolvable:$true] %s119_s27  ;;  %s30_s6 = int_to_ptr.hbm [resolvable:$true] %s29_s6 }
   0xf   :  { %125 = dma.hbm_to_vmem [thread:$0]  %s118_s23, 4096, %s120_s27, [#allocation15], %s2688_s16, %s2688_s16, %s2689_s17  }
  0x10   :  { %s53_s9 = sshll.u32 %s2831_s2, 4  ;;  %s2693_s15 = smov [#allocation2]   ;;  %s54_s9 = int_to_ptr.hbm [resolvable:$true] %s53_s9 }
  0x11   :  { %s31_s18 = sshll.u32 %s2693_s15, 4  ;;  %s2694_s19 = smov [#allocation7]   ;;  %s32_s18 = int_to_ptr.vmem [resolvable:$true] %s31_s18 }
  0x12   :  { %34 = dma.hbm_to_vmem [thread:$0]  %s30_s6, 64, %s32_s18, [#allocation3]  }
  0x13   :  { %s55_s20 = sshll.u32 %s2694_s19, 4  ;;  %s78_s0 = sshll.u32 %s2834_s5, 4  ;;  %s56_s20 = int_to_ptr.vmem [resolvable:$true] %s55_s20  ;;  %s79_s0 = int_to_ptr.hbm [resolvable:$true] %s78_s0 }
  0x14   :  { %58 = dma.hbm_to_vmem [thread:$0]  %s54_s9, 32, %s56_s20, [#allocation6]  }
  0x15   :  { %s102_s23 = sshll.u32 %s2836_s7, 4  ;;  %s2695_s24 = smov [#allocation10]   ;;  %s103_s23 = int_to_ptr.hbm [resolvable:$true] %s102_s23 }
  0x16   :  { %s80_s2 = sshll.u32 %s2695_s24, 4  ;;  %s2696_s25 = smov [#allocation13]   ;;  %s81_s2 = int_to_ptr.vmem [resolvable:$true] %s80_s2 }
  0x17   :  { %86 = dma.hbm_to_vmem [thread:$0]  %s79_s0, 4096, %s81_s2, [#allocation9], %s2688_s16, %s2688_s16, %s2689_s17  }
  0x18   :  { %s104_s26 = sshll.u32 %s2696_s25, 4  ;;  %s2697_s27 = smov 192   ;;  %s105_s26 = int_to_ptr.vmem [resolvable:$true] %s104_s26 }
  0x19   :  { %s2698_s5 = smov 12   ;;  %s132_s6 = sshll.u32 %s2840_s11, 4  ;;  %s133_s6 = int_to_ptr.hbm [resolvable:$true] %s132_s6 }
  0x1a   :  { %110 = dma.hbm_to_vmem [thread:$0]  %s103_s23, 6144, %s105_s26, [#allocation12], %s2697_s27, %s2697_s27, %s2698_s5  }
  0x1b   :  { %s2699_s7 = smov [#allocation16]   ;;  %s2700_s14 = smov 64  }
  0x1c   :  { %s134_s30 = sshll.u32 %s2699_s7, 4  ;;  %s2701_s9 = smov 4   ;;  %s135_s30 = int_to_ptr.vmem [resolvable:$true] %s134_s30 }
  0x1d   :  { %140 = dma.hbm_to_vmem [thread:$0]  %s133_s6, 2048, %s135_s30, [#allocation15], %s2700_s14, %s2700_s14, %s2701_s9  }
  0x1e   :  { %2675 = dma.done.wait [#allocation3], 64  }
  0x1f   :  { %2676 = vsyncadd [#allocation3], 4294967232 }
  0x20   :  { %2677 = dma.done.wait [#allocation6], 544  }
  0x21   :  { %2678 = vsyncadd [#allocation6], 4294966752 }
  0x22   :  { %2679 = dma.done.wait [#allocation9], 8192  }
  0x23   :  { %2680 = vsyncadd [#allocation9], 4294959104 }
  0x24   :  { %2681 = dma.done.wait [#allocation12], 6176  }
  0x25   :  { %2682 = vsyncadd [#allocation12], 4294961120 }
  0x26   :  { %2683 = dma.done.wait [#allocation15], 6144  }
  0x27   :  { %2684 = vsyncadd [#allocation15], 4294961152  ;;  %v1606_v0 = vld [vmem:[#allocation5 + $0x10] sm:$0xf]  ;;  %v2257_v1 = vld [vmem:[#allocation5 + $0x14] sm:$0xf0] }
  0x28   :  { %v2256_v2 = vld [vmem:[#allocation5 + $0x14] sm:$0xf]  ;;  %v1607_v3 = vor.u32 %v2257_v1, %v1606_v0  ;;  %v1608_v4 = vld [vmem:[#allocation5 + $0x18] sm:$0xf0]  ;;  %v1598_v5 = vld [vmem:[#allocation5] sm:$0xf] }
  0x29   :  { %v2255_v6 = vld [vmem:[#allocation5 + $0x4] sm:$0xf0]  ;;  %v1611_v7 = vor.u32 %v2256_v2, %v1608_v4  ;;  %v2254_v8 = vld [vmem:[#allocation5 + $0x4] sm:$0xf]  ;;  %v1600_v9 = vld [vmem:[#allocation5 + $0x8] sm:$0xf0] }
  0x2a   :  { %vm211_vm0 = vcmask 261120   ;;  %221 = vmatpush.bf16.msra.mxu0 %v1607_v3  ;;  %v1599_v10 = vor.u32 %v2255_v6, %v1598_v5  ;;  %v1672_v11 = vld [vmem:[#allocation8 + $0x70] sm:$0xf]  ;;  %v2273_v12 = vld [vmem:[#allocation8 + $0x74] sm:$0xf0]  ;;  %v1603_v14 = vor.u32 %v2254_v8, %v1600_v9  ;;  %s2702_s19 = smov [#allocation17]  }
  0x2b   :  { %v1736_v13 = vld [vmem:[#allocation8 + $0xf0] sm:$0xf]  ;;  %234 = vmatpush.bf16.msra.mxu1 %v1611_v7  ;;  %v1673_v15 = vor.u32 %v2273_v12, %v1672_v11  ;;  %v2289_v16 = vld [vmem:[#allocation8 + $0xf4] sm:$0xf0]  ;;  %v2272_v17 = vld [vmem:[#allocation8 + $0x74] sm:$0xf] }
  0x2c   :  { %v1674_v18 = vld [vmem:[#allocation8 + $0x78] sm:$0xf0]  ;;  %v1737_v20 = vor.u32 %v2289_v16, %v1736_v13  ;;  %v2288_v22 = vld [vmem:[#allocation8 + $0xf4] sm:$0xf]  ;;  %v1664_v24 = vld [vmem:[#allocation8 + $0x60] sm:$0xf] }
  0x2d   :  { %v180_v19 = vld [vmem:[#allocation2] sm:$0xf]  ;;  %v1677_v21 = vor.u32 %v2272_v17, %v1674_v18  ;;  %443 = vmatpush.bf16.msra.mxu2 %v1673_v15  ;;  %v2271_v26 = vld [vmem:[#allocation8 + $0x64] sm:$0xf0]  ;;  %v1728_v27 = vld [vmem:[#allocation8 + $0xe0] sm:$0xf] }
  0x2e   :  { %v1738_v23 = vld [vmem:[#allocation8 + $0xf8] sm:$0xf0]  ;;  %v2287_v28 = vld [vmem:[#allocation8 + $0xe4] sm:$0xf0]  ;;  %222 = vmatpush.bf16.msra.mxu0 %v1599_v10  ;;  %456 = vmatpush.bf16.msra.mxu3 %v1737_v20  ;;  %v1665_v29 = vor.u32 %v2271_v26, %v1664_v24  ;;  %v2270_v31 = vld [vmem:[#allocation8 + $0x64] sm:$0xf] }
  0x2f   :  { %v1741_v25 = vor.u32 %v2288_v22, %v1738_v23  ;;  %v1729_v30 = vor.u32 %v2287_v28, %v1728_v27  ;;  %v1666_v32 = vld [vmem:[#allocation8 + $0x68] sm:$0xf0]  ;;  %v2286_v33 = vld [vmem:[#allocation8 + $0xe4] sm:$0xf]  ;;  %235 = vmatpush.bf16.msra.mxu1 %v1603_v14  ;;  %v1656_v36 = vld [vmem:[#allocation8 + $0x50] sm:$0xf] }
  0x30   :  { %v1669_v34 = vor.u32 %v2270_v31, %v1666_v32  ;;  %v1730_v35 = vld [vmem:[#allocation8 + $0xe8] sm:$0xf0]  ;;  %v2269_v37 = vld [vmem:[#allocation8 + $0x54] sm:$0xf0]  ;;  %v1720_v39 = vld [vmem:[#allocation8 + $0xd0] sm:$0xf] }
  0x31   :  { %v1733_v38 = vor.u32 %v2286_v33, %v1730_v35  ;;  %v2285_v40 = vld [vmem:[#allocation8 + $0xd4] sm:$0xf0]  ;;  %v2268_v41 = vld [vmem:[#allocation8 + $0x54] sm:$0xf]  ;;  %1612 = vmatmul.msk.bf16.vlgmr.msra.gmra.mxu0 %vm211_vm0, %v180_v19  ;;  %444 = vmatpush.bf16.msra.mxu2 %v1665_v29  ;;  %v1657_v42 = vor.u32 %v2269_v37, %v1656_v36  ;;  %v1658_v43 = vld [vmem:[#allocation8 + $0x58] sm:$0xf0] }
  0x32   :  { %469 = vmatpush.bf16.msrb.mxu0 %v1677_v21  ;;  %v2284_v44 = vld [vmem:[#allocation8 + $0xd4] sm:$0xf]  ;;  %v1722_v45 = vld [vmem:[#allocation8 + $0xd8] sm:$0xf0]  ;;  %1613 = vmatmul.msk.bf16.vlgmr.msra.gmra.mxu1 %vm211_vm0, %v180_v19  ;;  %v1721_v46 = vor.u32 %v2285_v40, %v1720_v39  ;;  %v1648_v47 = vld [vmem:[#allocation8 + $0x40] sm:$0xf]  ;;  %v1661_v49 = vor.u32 %v2268_v41, %v1658_v43 }
  0x33   :  { %482 = vmatpush.bf16.msrb.mxu1 %v1741_v25  ;;  %457 = vmatpush.bf16.msra.mxu3 %v1729_v30  ;;  %v2267_v48 = vld [vmem:[#allocation8 + $0x44] sm:$0xf0]  ;;  %v1712_v50 = vld [vmem:[#allocation8 + $0xc0] sm:$0xf]  ;;  %v1725_v52 = vor.u32 %v2284_v44, %v1722_v45  ;;  %v2266_v53 = vld [vmem:[#allocation8 + $0x44] sm:$0xf] }
  0x34   :  { %v2283_v51 = vld [vmem:[#allocation8 + $0xc4] sm:$0xf0]  ;;  %v1650_v54 = vld [vmem:[#allocation8 + $0x48] sm:$0xf0]  ;;  %v1649_v55 = vor.u32 %v2267_v48, %v1648_v47  ;;  %v2282_v56 = vld [vmem:[#allocation8 + $0xc4] sm:$0xf] }
  0x35   :  { %445 = vmatpush.bf16.msra.mxu2 %v1657_v42  ;;  %v1714_v57 = vld [vmem:[#allocation8 + $0xc8] sm:$0xf0]  ;;  %v1713_v58 = vor.u32 %v2283_v51, %v1712_v50  ;;  %v1640_v59 = vld [vmem:[#allocation8 + $0x30] sm:$0xf]  ;;  %v2265_v60 = vld [vmem:[#allocation8 + $0x34] sm:$0xf0]  ;;  %v1653_v61 = vor.u32 %v2266_v53, %v1650_v54 }
  0x36   :  { %470 = vmatpush.bf16.msrb.mxu0 %v1669_v34  ;;  %v1704_v62 = vld [vmem:[#allocation8 + $0xb0] sm:$0xf]  ;;  %v2281_v63 = vld [vmem:[#allocation8 + $0xb4] sm:$0xf0]  ;;  %v1717_v0 = vor.u32 %v2282_v56, %v1714_v57  ;;  %v2264_v1 = vld [vmem:[#allocation8 + $0x34] sm:$0xf]  ;;  %v1641_v3 = vor.u32 %v2265_v60, %v1640_v59 }
  0x37   :  { %483 = vmatpush.bf16.msrb.mxu1 %v1733_v38  ;;  %458 = vmatpush.bf16.msra.mxu3 %v1721_v46  ;;  %v1642_v2 = vld [vmem:[#allocation8 + $0x38] sm:$0xf0]  ;;  %v2280_v4 = vld [vmem:[#allocation8 + $0xb4] sm:$0xf]  ;;  %v1705_v6 = vor.u32 %v2281_v63, %v1704_v62  ;;  %v1632_v7 = vld [vmem:[#allocation8 + $0x20] sm:$0xf] }
  0x38   :  { %v1706_v5 = vld [vmem:[#allocation8 + $0xb8] sm:$0xf0]  ;;  %v2263_v8 = vld [vmem:[#allocation8 + $0x24] sm:$0xf0]  ;;  %v1645_v9 = vor.u32 %v2264_v1, %v1642_v2  ;;  %v1696_v10 = vld [vmem:[#allocation8 + $0xa0] sm:$0xf] }
  0x39   :  { %446 = vmatpush.bf16.msra.mxu2 %v1649_v55  ;;  %v2279_v11 = vld [vmem:[#allocation8 + $0xa4] sm:$0xf0]  ;;  %v1709_v12 = vor.u32 %v2280_v4, %v1706_v5  ;;  %v2262_v13 = vld [vmem:[#allocation8 + $0x24] sm:$0xf]  ;;  %v1634_v14 = vld [vmem:[#allocation8 + $0x28] sm:$0xf0]  ;;  %v1633_v15 = vor.u32 %v2263_v8, %v1632_v7 }
  0x3a   :  { %471 = vmatpush.bf16.msrb.mxu0 %v1661_v49  ;;  %v2278_v16 = vld [vmem:[#allocation8 + $0xa4] sm:$0xf]  ;;  %v1698_v17 = vld [vmem:[#allocation8 + $0xa8] sm:$0xf0]  ;;  %v1697_v18 = vor.u32 %v2279_v11, %v1696_v10  ;;  %v1637_v19 = vor.u32 %v2262_v13, %v1634_v14  ;;  %v1624_v21 = vld [vmem:[#allocation8 + $0x10] sm:$0xf] }
  0x3b   :  { %484 = vmatpush.bf16.msrb.mxu1 %v1725_v52  ;;  %459 = vmatpush.bf16.msra.mxu3 %v1713_v58  ;;  %v1701_v20 = vor.u32 %v2278_v16, %v1698_v17  ;;  %v2261_v22 = vld [vmem:[#allocation8 + $0x14] sm:$0xf0]  ;;  %v1688_v23 = vld [vmem:[#allocation8 + $0x90] sm:$0xf]  ;;  %v2260_v26 = vld [vmem:[#allocation8 + $0x14] sm:$0xf] }
  0x3c   :  { %v1625_v24 = vor.u32 %v2261_v22, %v1624_v21  ;;  %v2277_v25 = vld [vmem:[#allocation8 + $0x94] sm:$0xf0]  ;;  %v1626_v27 = vld [vmem:[#allocation8 + $0x18] sm:$0xf0]  ;;  %v2276_v30 = vld [vmem:[#allocation8 + $0x94] sm:$0xf] }
  0x3d   :  { %447 = vmatpush.bf16.msra.mxu2 %v1641_v3  ;;  %v1689_v28 = vor.u32 %v2277_v25, %v1688_v23  ;;  %v1629_v29 = vor.u32 %v2260_v26, %v1626_v27  ;;  %v1690_v31 = vld [vmem:[#allocation8 + $0x98] sm:$0xf0]  ;;  %v1616_v33 = vld [vmem:[#allocation8] sm:$0xf]  ;;  %v2259_v34 = vld [vmem:[#allocation8 + $0x4] sm:$0xf0] }
  0x3e   :  { %472 = vmatpush.bf16.msrb.mxu0 %v1653_v61  ;;  %v1693_v32 = vor.u32 %v2276_v30, %v1690_v31  ;;  %v1680_v35 = vld [vmem:[#allocation8 + $0x80] sm:$0xf]  ;;  %v1617_v36 = vor.u32 %v2259_v34, %v1616_v33  ;;  %v2275_v37 = vld [vmem:[#allocation8 + $0x84] sm:$0xf0]  ;;  %v2258_v38 = vld [vmem:[#allocation8 + $0x4] sm:$0xf] }
  0x3f   :  { %485 = vmatpush.bf16.msrb.mxu1 %v1717_v0  ;;  %460 = vmatpush.bf16.msra.mxu3 %v1705_v6  ;;  %v1618_v39 = vld [vmem:[#allocation8 + $0x8] sm:$0xf0]  ;;  %v1681_v40 = vor.u32 %v2275_v37, %v1680_v35  ;;  %v2274_v42 = vld [vmem:[#allocation8 + $0x84] sm:$0xf]  ;;  %v1864_v45 = vld [vmem:[#allocation10 + $0xf0] sm:$0xf] }
  0x40   :  { %v1621_v41 = vor.u32 %v2258_v38, %v1618_v39  ;;  %v1682_v43 = vld [vmem:[#allocation8 + $0x88] sm:$0xf0]  ;;  %v2321_v46 = vld [vmem:[#allocation10 + $0xf4] sm:$0xf0]  ;;  %v2320_v47 = vld [vmem:[#allocation10 + $0xf4] sm:$0xf] }
  0x41   :  { %448 = vmatpush.bf16.msra.mxu2 %v1633_v15  ;;  %v1685_v44 = vor.u32 %v2274_v42, %v1682_v43  ;;  %v1865_v48 = vor.u32 %v2321_v46, %v1864_v45  ;;  %v1866_v49 = vld [vmem:[#allocation10 + $0xf8] sm:$0xf0]  ;;  %v1856_v50 = vld [vmem:[#allocation10 + $0xe0] sm:$0xf]  ;;  %v2319_v51 = vld [vmem:[#allocation10 + $0xe4] sm:$0xf0] }
  0x42   :  { %473 = vmatpush.bf16.msrb.mxu0 %v1645_v9  ;;  %v1869_v52 = vor.u32 %v2320_v47, %v1866_v49  ;;  %v2318_v53 = vld [vmem:[#allocation10 + $0xe4] sm:$0xf]  ;;  %v1858_v54 = vld [vmem:[#allocation10 + $0xe8] sm:$0xf0]  ;;  %v1800_v55 = vld [vmem:[#allocation10 + $0x70] sm:$0xf]  ;;  %v1857_v56 = vor.u32 %v2319_v51, %v1856_v50 }
  0x43   :  { %486 = vmatpush.bf16.msrb.mxu1 %v1709_v12  ;;  %461 = vmatpush.bf16.msra.mxu3 %v1697_v18  ;;  %v2305_v57 = vld [vmem:[#allocation10 + $0x74] sm:$0xf0]  ;;  %v2304_v58 = vld [vmem:[#allocation10 + $0x74] sm:$0xf]  ;;  %v1802_v59 = vld [vmem:[#allocation10 + $0x78] sm:$0xf0]  ;;  %v1861_v60 = vor.u32 %v2318_v53, %v1858_v54 }
  0x44   :  { %v1801_v61 = vor.u32 %v2305_v57, %v1800_v55  ;;  %v1805_v62 = vor.u32 %v2304_v58, %v1802_v59  ;;  %v1848_v63 = vld [vmem:[#allocation10 + $0xd0] sm:$0xf]  ;;  %v2317_v0 = vld [vmem:[#allocation10 + $0xd4] sm:$0xf0]  ;;  %v2316_v1 = vld [vmem:[#allocation10 + $0xd4] sm:$0xf] }
  0x45   :  { %449 = vmatpush.bf16.msra.mxu2 %v1625_v24  ;;  %v1850_v2 = vld [vmem:[#allocation10 + $0xd8] sm:$0xf0]  ;;  %v1792_v3 = vld [vmem:[#allocation10 + $0x60] sm:$0xf]  ;;  %v2303_v4 = vld [vmem:[#allocation10 + $0x64] sm:$0xf0]  ;;  %v1849_v8 = vor.u32 %v2317_v0, %v1848_v63 }
  0x46   :  { %474 = vmatpush.bf16.msrb.mxu0 %v1637_v19  ;;  %v1793_v5 = vor.u32 %v2303_v4, %v1792_v3  ;;  %v2302_v6 = vld [vmem:[#allocation10 + $0x64] sm:$0xf]  ;;  %v1794_v7 = vld [vmem:[#allocation10 + $0x68] sm:$0xf0]  ;;  %v1840_v10 = vld [vmem:[#allocation10 + $0xc0] sm:$0xf]  ;;  %v1853_v12 = vor.u32 %v2316_v1, %v1850_v2 }
  0x47   :  { %487 = vmatpush.bf16.msrb.mxu1 %v1701_v20  ;;  %462 = vmatpush.bf16.msra.mxu3 %v1689_v28  ;;  %v1797_v9 = vor.u32 %v2302_v6, %v1794_v7  ;;  %v2315_v11 = vld [vmem:[#allocation10 + $0xc4] sm:$0xf0]  ;;  %v1784_v13 = vld [vmem:[#allocation10 + $0x50] sm:$0xf]  ;;  %v2301_v14 = vld [vmem:[#allocation10 + $0x54] sm:$0xf0] }
  0x48   :  { %v2300_v15 = vld [vmem:[#allocation10 + $0x54] sm:$0xf]  ;;  %v2314_v16 = vld [vmem:[#allocation10 + $0xc4] sm:$0xf]  ;;  %v1842_v17 = vld [vmem:[#allocation10 + $0xc8] sm:$0xf0]  ;;  %v1785_v19 = vor.u32 %v2301_v14, %v1784_v13  ;;  %v1841_v22 = vor.u32 %v2315_v11, %v1840_v10 }
  0x49   :  { %450 = vmatpush.bf16.msra.mxu2 %v1617_v36  ;;  %v1786_v18 = vld [vmem:[#allocation10 + $0x58] sm:$0xf0]  ;;  %v1776_v21 = vld [vmem:[#allocation10 + $0x40] sm:$0xf]  ;;  %v2299_v23 = vld [vmem:[#allocation10 + $0x44] sm:$0xf0]  ;;  %v1845_v26 = vor.u32 %v2314_v16, %v1842_v17 }
  0x4a   :  { %475 = vmatpush.bf16.msrb.mxu0 %v1629_v29  ;;  %v1789_v20 = vor.u32 %v2300_v15, %v1786_v18  ;;  %v2298_v24 = vld [vmem:[#allocation10 + $0x44] sm:$0xf]  ;;  %v1778_v25 = vld [vmem:[#allocation10 + $0x48] sm:$0xf0]  ;;  %v1832_v27 = vld [vmem:[#allocation10 + $0xb0] sm:$0xf]  ;;  %v1777_v31 = vor.u32 %v2299_v23, %v1776_v21 }
  0x4b   :  { %488 = vmatpush.bf16.msrb.mxu1 %v1693_v32  ;;  %463 = vmatpush.bf16.msra.mxu3 %v1681_v40  ;;  %v2313_v28 = vld [vmem:[#allocation10 + $0xb4] sm:$0xf0]  ;;  %v2312_v29 = vld [vmem:[#allocation10 + $0xb4] sm:$0xf]  ;;  %v1834_v30 = vld [vmem:[#allocation10 + $0xb8] sm:$0xf0]  ;;  %v1781_v32 = vor.u32 %v2298_v24, %v1778_v25 }
  0x4c   :  { %v1833_v33 = vor.u32 %v2313_v28, %v1832_v27  ;;  %v1837_v34 = vor.u32 %v2312_v29, %v1834_v30  ;;  %v1824_v35 = vld [vmem:[#allocation10 + $0xa0] sm:$0xf]  ;;  %v2311_v36 = vld [vmem:[#allocation10 + $0xa4] sm:$0xf0]  ;;  %v185_v37 = vld [vmem:[#allocation7] sm:$0x3] }
  0x4d   :  { %697 = vmatpush.bf16.msrb.mxu2 %v1801_v61  ;;  %v2310_v38 = vld [vmem:[#allocation10 + $0xa4] sm:$0xf]  ;;  %v1826_v39 = vld [vmem:[#allocation10 + $0xa8] sm:$0xf0]  ;;  %v1825_v40 = vor.u32 %v2311_v36, %v1824_v35  ;;  %v188_v43 = vperm.slane %v185_v37, 1  ;;  %s1580_s20 = sshll.u32 %s2702_s19, 4  ;;  %s1581_s20 = int_to_ptr.vmem [resolvable:$true] %s1580_s20 }
  0x4e   :  { %476 = vmatpush.bf16.msrb.mxu0 %v1621_v41  ;;  %v187_v41 = vperm.slane %v185_v37, 0  ;;  %v1829_v42 = vor.u32 %v2310_v38, %v1826_v39  ;;  %v1768_v54 = vld [vmem:[#allocation10 + $0x30] sm:$0xf]  ;;  %v2297_v55 = vld [vmem:[#allocation10 + $0x34] sm:$0xf0]  ;;  %s1582_s0 = sshll.u32 %s2842_s13, 4  ;;  %s1583_s0 = int_to_ptr.hbm [resolvable:$true] %s1582_s0 }
  0x4f   :  { %489 = vmatpush.bf16.msrb.mxu1 %v1685_v44  ;;  %710 = vmatpush.bf16.msrb.mxu3 %v1865_v48  ;;  %v1769_v57 = vor.u32 %v2297_v55, %v1768_v54  ;;  %v1770_v58 = vld [vmem:[#allocation10 + $0x38] sm:$0xf0]  ;;  %v2309_v61 = vld [vmem:[#allocation10 + $0x94] sm:$0xf0]  ;;  %v1760_v2 = vld [vmem:[#allocation10 + $0x20] sm:$0xf] }
  0x50   :  { %v1818_v0 = vld [vmem:[#allocation10 + $0x98] sm:$0xf0]  ;;  %v2295_v3 = vld [vmem:[#allocation10 + $0x24] sm:$0xf0]  ;;  %v2294_v4 = vld [vmem:[#allocation10 + $0x24] sm:$0xf] }
  0x51   :  { %698 = vmatpush.bf16.msrb.mxu2 %v1793_v5  ;;  %v1761_v5 = vor.u32 %v2295_v3, %v1760_v2  ;;  %v1762_v6 = vld [vmem:[#allocation10 + $0x28] sm:$0xf0]  ;;  %v2306_v10 = vld [vmem:[#allocation10 + $0x84] sm:$0xf]  ;;  %v1752_v14 = vld [vmem:[#allocation10 + $0x10] sm:$0xf] }
  0x52   :  { %723 = vmatpush.bf16.msra.mxu0 %v1805_v62  ;;  %v2308_v62 = vld [vmem:[#allocation10 + $0x94] sm:$0xf]  ;;  %v1765_v7 = vor.u32 %v2294_v4, %v1762_v6  ;;  %v2293_v15 = vld [vmem:[#allocation10 + $0x14] sm:$0xf0]  ;;  %v1754_v18 = vld [vmem:[#allocation10 + $0x18] sm:$0xf0] }
  0x53   :  { %736 = vmatpush.bf16.msra.mxu1 %v1869_v52  ;;  %711 = vmatpush.bf16.msrb.mxu3 %v1857_v56  ;;  %v2296_v56 = vld [vmem:[#allocation10 + $0x34] sm:$0xf]  ;;  %v1821_v1 = vor.u32 %v2308_v62, %v1818_v0  ;;  %v1753_v16 = vor.u32 %v2293_v15, %v1752_v14  ;;  %v2291_v21 = vld [vmem:[#allocation10 + $0x4] sm:$0xf0]  ;;  %v1746_v24 = vld [vmem:[#allocation10 + $0x8] sm:$0xf0] }
  0x54   :  { %v1773_v59 = vor.u32 %v2296_v56, %v1770_v58  ;;  %v2292_v17 = vld [vmem:[#allocation10 + $0x14] sm:$0xf]  ;;  %v2365_v30 = vld [vmem:[#allocation13 + $0x158] sm:$0xf0]  ;;  %v2028_v36 = vld [vmem:[#allocation13 + $0x138] sm:$0xf] }
  0x55   :  { %699 = vmatpush.bf16.msrb.mxu2 %v1785_v19  ;;  %v1757_v19 = vor.u32 %v2292_v17, %v1754_v18  ;;  %v2368_v27 = vld [vmem:[#allocation13 + $0x170] sm:$0xf0]  ;;  %v2040_v28 = vld [vmem:[#allocation13 + $0x150] sm:$0xf]  ;;  %v2341_v37 = vld [vmem:[#allocation13 + $0x98] sm:$0xf0] }
  0x56   :  { %724 = vmatpush.bf16.msra.mxu0 %v1797_v9  ;;  %v2307_v9 = vld [vmem:[#allocation10 + $0x84] sm:$0xf0]  ;;  %v2041_v35 = vor.u32 %v2365_v30, %v2040_v28  ;;  %v2361_v55 = vld [vmem:[#allocation13 + $0x13c] sm:$0xf]  ;;  %v1920_v56 = vld [vmem:[#allocation13 + $0x60] sm:$0xf] }
  0x57   :  { %737 = vmatpush.bf16.msra.mxu1 %v1861_v60  ;;  %712 = vmatpush.bf16.msrb.mxu3 %v1849_v8  ;;  %v1816_v60 = vld [vmem:[#allocation10 + $0x90] sm:$0xf]  ;;  %v1808_v8 = vld [vmem:[#allocation10 + $0x80] sm:$0xf]  ;;  %v2362_v38 = vld [vmem:[#allocation13 + $0x140] sm:$0xf0] }
  0x58   :  { %v1817_v63 = vor.u32 %v2309_v61, %v1816_v60  ;;  %v1809_v11 = vor.u32 %v2307_v9, %v1808_v8  ;;  %v2030_v58 = vld [vmem:[#allocation13 + $0x144] sm:$0xf0]  ;;  %v1946_v60 = vld [vmem:[#allocation13 + $0x9c] sm:$0xf0]  ;;  %v277_v61 = vld [vmem:[%s2833_s4] sm:$0x3] }
  0x59   :  { %700 = vmatpush.bf16.msrb.mxu2 %v1777_v31  ;;  %v1956_v31 = vld [vmem:[#allocation13 + $0xa8] sm:$0xf]  ;;  %v2356_v0 = vld [vmem:[#allocation13 + $0x110] sm:$0xf0]  ;;  %v2358_v4 = vld [vmem:[#allocation13 + $0x124] sm:$0xf] }
  0x5a   :  { %725 = vmatpush.bf16.msra.mxu0 %v1789_v20  ;;  %v1744_v20 = vld [vmem:[#allocation10] sm:$0xf]  ;;  %v2332_v8 = vld [vmem:[#allocation13 + $0x50] sm:$0xf0]  ;;  %v1934_v9 = vld [vmem:[#allocation13 + $0x84] sm:$0xf0] }
  0x5b   :  { %738 = vmatpush.bf16.msra.mxu1 %v1853_v12  ;;  %713 = vmatpush.bf16.msrb.mxu3 %v1841_v22  ;;  %v1810_v12 = vld [vmem:[#allocation10 + $0x88] sm:$0xf0]  ;;  %v2290_v22 = vld [vmem:[#allocation10 + $0x4] sm:$0xf]  ;;  %v1745_v23 = vor.u32 %v2291_v21, %v1744_v20  ;;  %v2337_v6 = vld [vmem:[#allocation13 + $0x7c] sm:$0xf] }
  0x5c   :  { %v1813_v13 = vor.u32 %v2306_v10, %v1810_v12  ;;  %v1749_v25 = vor.u32 %v2290_v22, %v1746_v24  ;;  %v280_v10 = vperm.slane %v277_v61, 1  ;;  %v2353_v15 = vld [vmem:[#allocation13 + $0xf8] sm:$0xf0]  ;;  %v2355_v17 = vld [vmem:[#allocation13 + $0x10c] sm:$0xf] }
  0x5d   :  { %701 = vmatpush.bf16.msrb.mxu2 %v1769_v57  ;;  %v2335_v57 = vld [vmem:[#allocation13 + $0x68] sm:$0xf0]  ;;  %v2006_v18 = vld [vmem:[#allocation13 + $0x114] sm:$0xf0]  ;;  %v1896_v20 = vld [vmem:[#allocation13 + $0x30] sm:$0xf] }
  0x5e   :  { %726 = vmatpush.bf16.msra.mxu0 %v1781_v32  ;;  %v2344_v32 = vld [vmem:[#allocation13 + $0xb0] sm:$0xf0]  ;;  %v1921_v3 = vor.u32 %v2335_v57, %v1920_v56  ;;  %v2329_v21 = vld [vmem:[#allocation13 + $0x38] sm:$0xf0]  ;;  %v1980_v28 = vld [vmem:[#allocation13 + $0xd8] sm:$0xf] }
  0x5f   :  { %739 = vmatpush.bf16.msra.mxu1 %v1845_v26  ;;  %714 = vmatpush.bf16.msrb.mxu3 %v1833_v33  ;;  %v2052_v26 = vld [vmem:[#allocation13 + $0x168] sm:$0xf]  ;;  %v1957_v33 = vor.u32 %v2344_v32, %v1956_v31  ;;  %v1897_v30 = vor.u32 %v2329_v21, %v1896_v20  ;;  %v1884_v31 = vld [vmem:[#allocation13 + $0x18] sm:$0xf]  ;;  %v2326_v32 = vld [vmem:[#allocation13 + $0x20] sm:$0xf0] }
  0x60   :  { %v2053_v29 = vor.u32 %v2368_v27, %v2052_v26  ;;  %v279_v27 = vperm.slane %v277_v61, 0  ;;  %v2352_v56 = vld [vmem:[#allocation13 + $0xf4] sm:$0xf]  ;;  %v1994_v57 = vld [vmem:[#allocation13 + $0xfc] sm:$0xf0] }
  0x61   :  { %702 = vmatpush.bf16.msrb.mxu2 %v1761_v5  ;;  %v2018_v5 = vld [vmem:[#allocation13 + $0x12c] sm:$0xf0]  ;;  %v1872_v61 = vld [vmem:[#allocation13] sm:$0xf]  ;;  %v2024_v21 = vld [vmem:[#allocation13 + $0x128] sm:$0xf] }
  0x62   :  { %727 = vmatpush.bf16.msra.mxu0 %v1773_v59  ;;  %v2340_v59 = vld [vmem:[#allocation13 + $0x94] sm:$0xf]  ;;  %v2021_v14 = vor.u32 %v2358_v4, %v2018_v5  ;;  %v2345_v5 = vld [vmem:[#allocation13 + $0xb8] sm:$0xf0]  ;;  %v1970_v20 = vld [vmem:[#allocation13 + $0xcc] sm:$0xf0] }
  0x63   :  { %740 = vmatpush.bf16.msra.mxu1 %v1837_v34  ;;  %715 = vmatpush.bf16.msrb.mxu3 %v1825_v40  ;;  %v1944_v34 = vld [vmem:[#allocation13 + $0x90] sm:$0xf]  ;;  %v2367_v40 = vld [vmem:[#allocation13 + $0x16c] sm:$0xf]  ;;  %v1949_v2 = vor.u32 %v2340_v59, %v1946_v60  ;;  %v1997_v59 = vor.u32 %v2352_v56, %v1994_v57  ;;  %v2366_v60 = vld [vmem:[#allocation13 + $0x160] sm:$0xf0] }
  0x64   :  { %v1945_v39 = vor.u32 %v2341_v37, %v1944_v34 }
  0x65   :  { %703 = vmatpush.bf16.msrb.mxu2 %v1753_v16 }
  0x66   :  { %728 = vmatpush.bf16.msra.mxu0 %v1765_v7  ;;  %v1908_v7 = vld [vmem:[#allocation13 + $0x48] sm:$0xf] }
  0x67   :  { %741 = vmatpush.bf16.msra.mxu1 %v1829_v42  ;;  %716 = vmatpush.bf16.msrb.mxu3 %v1817_v63  ;;  %v2004_v63 = vld [vmem:[#allocation13 + $0x108] sm:$0xf]  ;;  %v1909_v16 = vor.u32 %v2332_v8, %v1908_v7  ;;  %v2349_v7 = vld [vmem:[#allocation13 + $0xdc] sm:$0xf] }
  0x68   :  { %v2005_v12 = vor.u32 %v2356_v0, %v2004_v63  ;;  %v1982_v8 = vld [vmem:[#allocation13 + $0xe4] sm:$0xf0] }
  0x69   :  { %704 = vmatpush.bf16.msrb.mxu2 %v1745_v23 }
  0x6a   :  { %729 = vmatpush.bf16.msra.mxu0 %v1757_v19 }
  0x6b   :  { %742 = vmatpush.bf16.msra.mxu1 %v1821_v1  ;;  %717 = vmatpush.bf16.msrb.mxu3 %v1809_v11  ;;  %v2033_v1 = vor.u32 %v2361_v55, %v2030_v58  ;;  %v1937_v11 = vor.u32 %v2337_v6, %v1934_v9  ;;  %v2048_v58 = vld [vmem:[#allocation13 + $0x158] sm:$0xf]  ;;  %v2036_v9 = vld [vmem:[#allocation13 + $0x140] sm:$0xf] }
  0x6c   :  { %v2049_v63 = vor.u32 %v2366_v60, %v2048_v58  ;;  %v1880_v58 = vld [vmem:[#allocation13 + $0x8] sm:$0xf] }
  0x6e   :  { %730 = vmatpush.bf16.msra.mxu0 %v1749_v25  ;;  %v2009_v25 = vor.u32 %v2355_v17, %v2006_v18  ;;  %v2342_v17 = vld [vmem:[#allocation13 + $0xa0] sm:$0xf0] }
  0x6f   :  { %743 = vmatpush.bf16.msra.mxu1 %v1813_v13  ;;  %v1992_v13 = vld [vmem:[#allocation13 + $0xf0] sm:$0xf] }
  0x70   :  { %v1993_v24 = vor.u32 %v2353_v15, %v1992_v13  ;;  %v2328_v13 = vld [vmem:[#allocation13 + $0x34] sm:$0xf] }
  0xae   :  { %v224_v44 = vpop.f32.mrf.mxu0 }
  0xaf   :  { %v225_v45 = vadd.f32 %v224_v44, %v187_v41  ;;  %v237_v46 = vpop.f32.mrf.mxu1  ;;  %v2054_v41 = vld [vmem:[#allocation13 + $0x174] sm:$0xf0]  ;;  %v2338_v44 = vld [vmem:[#allocation13 + $0x80] sm:$0xf0] }
  0xb0   :  { %v238_v47 = vadd.f32 %v237_v46, %v188_v43  ;;  %v2057_v42 = vor.u32 %v2367_v40, %v2054_v41  ;;  %v1932_v43 = vld [vmem:[#allocation13 + $0x78] sm:$0xf]  ;;  %v2042_v46 = vld [vmem:[#allocation13 + $0x15c] sm:$0xf0]  ;;  %v2347_v40 = vld [vmem:[#allocation13 + $0xc8] sm:$0xf0]  ;;  %v1885_v41 = vor.u32 %v2326_v32, %v1884_v31 }
  0xb1   :  { %v241_v48 = vmax.f32 %v225_v45, 0.0  ;;  %v2364_v45 = vld [vmem:[#allocation13 + $0x154] sm:$0xf]  ;;  %v2012_v31 = vld [vmem:[#allocation13 + $0x110] sm:$0xf] }
  0xb2   :  { %v242_v49 = vmax.f32 %v238_v47, 0.0  ;;  %v2029_v47 = vor.u32 %v2362_v38, %v2028_v36  ;;  %v2357_v32 = vld [vmem:[#allocation13 + $0x118] sm:$0xf0] }
  0xb3   :  { %v243_v50 = vpack.c.bf16 %v241_v48, %v241_v48  ;;  %v2045_v48 = vor.u32 %v2364_v45, %v2042_v46  ;;  %v2060_v45 = vld [vmem:[#allocation13 + $0x170] sm:$0xf]  ;;  %v2369_v46 = vld [vmem:[#allocation13 + $0x178] sm:$0xf0] }
  0xb4   :  { %v244_v51 = vpack.c.bf16 %v242_v49, %v242_v49  ;;  %v2343_v49 = vld [vmem:[#allocation13 + $0xac] sm:$0xf] }
  0xb5   :  { %451 = vmatmul.bf16.vlgmr.msra.gmra.mxu2 %v243_v50  ;;  %477 = vmatmul.bf16.vlgmr.msrb.gmra.mxu0 %v243_v50  ;;  %v1958_v50 = vld [vmem:[#allocation13 + $0xb4] sm:$0xf0] }
  0xb6   :  { %464 = vmatmul.bf16.vlgmr.msra.gmra.mxu3 %v244_v51  ;;  %490 = vmatmul.bf16.vlgmr.msrb.gmra.mxu1 %v244_v51  ;;  %v226_v52 = vpop.f32.mrf.mxu0  ;;  %v2016_v51 = vld [vmem:[#allocation13 + $0x120] sm:$0xf]  ;;  %v1961_v54 = vor.u32 %v2343_v49, %v1958_v50  ;;  %v2061_v49 = vor.u32 %v2369_v46, %v2060_v45 }
  0xb7   :  { %v239_v53 = vpop.f32.mrf.mxu1  ;;  %1092 = vmatpush.bf16.msra.mxu3 %v2053_v29  ;;  %1079 = vmatpush.bf16.msra.mxu2 %v1957_v33  ;;  %v2359_v52 = vld [vmem:[#allocation13 + $0x128] sm:$0xf0]  ;;  %v2350_v29 = vld [vmem:[#allocation13 + $0xe0] sm:$0xf0]  ;;  %v1988_v46 = vld [vmem:[#allocation13 + $0xe0] sm:$0xf] }
  0xb8   :  { %1118 = vmatpush.bf16.msrb.mxu1 %v2057_v42  ;;  %v1933_v53 = vor.u32 %v2338_v44, %v1932_v43  ;;  %1105 = vmatpush.bf16.msrb.mxu0 %v1961_v54  ;;  %v2017_v62 = vor.u32 %v2359_v52, %v2016_v51  ;;  %v1922_v54 = vld [vmem:[#allocation13 + $0x6c] sm:$0xf0] }
  0xbb   :  { %1093 = vmatpush.bf16.msra.mxu3 %v2041_v35  ;;  %1080 = vmatpush.bf16.msra.mxu2 %v1945_v39  ;;  %v1981_v35 = vor.u32 %v2350_v29, %v1980_v28  ;;  %v1968_v39 = vld [vmem:[#allocation13 + $0xc0] sm:$0xf]  ;;  %v2339_v29 = vld [vmem:[#allocation13 + $0x88] sm:$0xf0] }
  0xbc   :  { %1119 = vmatpush.bf16.msrb.mxu1 %v2045_v48  ;;  %1106 = vmatpush.bf16.msrb.mxu0 %v1949_v2  ;;  %v1910_v2 = vld [vmem:[#allocation13 + $0x54] sm:$0xf0] }
  0xbf   :  { %1094 = vmatpush.bf16.msra.mxu3 %v2029_v47  ;;  %1081 = vmatpush.bf16.msra.mxu2 %v1933_v53  ;;  %v1969_v47 = vor.u32 %v2347_v40, %v1968_v39  ;;  %v2334_v53 = vld [vmem:[#allocation13 + $0x64] sm:$0xf]  ;;  %v2000_v40 = vld [vmem:[#allocation13 + $0xf8] sm:$0xf] }
  0xc0   :  { %1120 = vmatpush.bf16.msrb.mxu1 %v2033_v1  ;;  %1107 = vmatpush.bf16.msrb.mxu0 %v1937_v11  ;;  %v1925_v55 = vor.u32 %v2334_v53, %v1922_v54  ;;  %v2331_v1 = vld [vmem:[#allocation13 + $0x4c] sm:$0xf]  ;;  %v1892_v54 = vld [vmem:[#allocation13 + $0x20] sm:$0xf] }
  0xc1   :  { %v1913_v4 = vor.u32 %v2331_v1, %v1910_v2  ;;  %v2363_v11 = vld [vmem:[#allocation13 + $0x148] sm:$0xf0]  ;;  %v2401_v1 = vld [vmem:[#allocation14 + $0xf4] sm:$0xf0] }
  0xc3   :  { %1095 = vmatpush.bf16.msra.mxu3 %v2017_v62  ;;  %1082 = vmatpush.bf16.msra.mxu2 %v1921_v3  ;;  %v2323_v62 = vld [vmem:[#allocation13 + $0x8] sm:$0xf0]  ;;  %v1964_v3 = vld [vmem:[#allocation13 + $0xb0] sm:$0xf] }
  0xc4   :  { %1121 = vmatpush.bf16.msrb.mxu1 %v2021_v14  ;;  %1108 = vmatpush.bf16.msrb.mxu0 %v1925_v55  ;;  %v1873_v0 = vor.u32 %v2323_v62, %v1872_v61  ;;  %v1965_v6 = vor.u32 %v2345_v5, %v1964_v3  ;;  %v1898_v14 = vld [vmem:[#allocation13 + $0x3c] sm:$0xf0]  ;;  %v2327_v55 = vld [vmem:[#allocation13 + $0x28] sm:$0xf0]  ;;  %v531_v62 = vld [vmem:[#allocation11] sm:$0x3] }
  0xc5   :  { %v1901_v15 = vor.u32 %v2328_v13, %v1898_v14  ;;  %v1893_v57 = vor.u32 %v2327_v55, %v1892_v54  ;;  %v2176_v3 = vld [vmem:[#allocation14 + $0xe0] sm:$0xf]  ;;  %v2120_v5 = vld [vmem:[#allocation14 + $0x70] sm:$0xf] }
  0xc6   :  { %v2168_v14 = vld [vmem:[#allocation14 + $0xd0] sm:$0xf] }
  0xc7   :  { %1096 = vmatpush.bf16.msra.mxu3 %v2005_v12  ;;  %1083 = vmatpush.bf16.msra.mxu2 %v1909_v16  ;;  %v2037_v12 = vor.u32 %v2363_v11, %v2036_v9  ;;  %v1952_v16 = vld [vmem:[#allocation13 + $0x98] sm:$0xf] }
  0xc8   :  { %1122 = vmatpush.bf16.msrb.mxu1 %v2009_v25  ;;  %1109 = vmatpush.bf16.msrb.mxu0 %v1913_v4  ;;  %v1953_v18 = vor.u32 %v2342_v17, %v1952_v16  ;;  %v2325_v25 = vld [vmem:[#allocation13 + $0x1c] sm:$0xf]  ;;  %v2399_v4 = vld [vmem:[#allocation14 + $0xe4] sm:$0xf0]  ;;  %v2112_v17 = vld [vmem:[#allocation14 + $0x60] sm:$0xf] }
  0xc9   :  { %v2177_v9 = vor.u32 %v2399_v4, %v2176_v3  ;;  %v2144_v3 = vld [vmem:[#allocation14 + $0xa0] sm:$0xf]  ;;  %v2391_v4 = vld [vmem:[#allocation14 + $0xa4] sm:$0xf0] }
  0xcb   :  { %1097 = vmatpush.bf16.msra.mxu3 %v1993_v24  ;;  %1084 = vmatpush.bf16.msra.mxu2 %v1897_v30 }
  0xcc   :  { %1123 = vmatpush.bf16.msrb.mxu1 %v1997_v59  ;;  %1110 = vmatpush.bf16.msrb.mxu0 %v1901_v15  ;;  %v2324_v59 = vld [vmem:[#allocation13 + $0x10] sm:$0xf0]  ;;  %v2397_v15 = vld [vmem:[#allocation14 + $0xd4] sm:$0xf0] }
  0xcd   :  { %v1881_v60 = vor.u32 %v2324_v59, %v1880_v58  ;;  %v2392_v58 = vld [vmem:[#allocation14 + $0xb4] sm:$0xf] }
  0xcf   :  { %1098 = vmatpush.bf16.msra.mxu3 %v1981_v35  ;;  %1085 = vmatpush.bf16.msra.mxu2 %v1885_v41  ;;  %v1874_v35 = vld [vmem:[#allocation13 + $0xc] sm:$0xf0]  ;;  %v2354_v41 = vld [vmem:[#allocation13 + $0x100] sm:$0xf0] }
  0xd3   :  { %1099 = vmatpush.bf16.msra.mxu3 %v1969_v47  ;;  %1086 = vmatpush.bf16.msra.mxu2 %v1873_v0  ;;  %v2351_v47 = vld [vmem:[#allocation13 + $0xe8] sm:$0xf0]  ;;  %v2184_v0 = vld [vmem:[#allocation14 + $0xf0] sm:$0xf] }
  0xd4   :  { %v2185_v2 = vor.u32 %v2401_v1, %v2184_v0  ;;  %v2378_v0 = vld [vmem:[#allocation14 + $0x44] sm:$0xf] }
 0x132   :  { %v478_v19 = vpop.f32.mrf.mxu0 }
 0x133   :  { %v479_v22 = vadd.f32 %v478_v19, %v280_v10  ;;  %v491_v23 = vpop.f32.mrf.mxu1  ;;  %v1985_v10 = vor.u32 %v2349_v7, %v1982_v8  ;;  %v2346_v19 = vld [vmem:[#allocation13 + $0xc4] sm:$0xf]  ;;  %v2400_v8 = vld [vmem:[#allocation14 + $0xf4] sm:$0xf] }
 0x135   :  { %v492_v26 = vadd.f32 %v491_v23, %v479_v22  ;;  %1124 = vmatpush.bf16.msrb.mxu1 %v1985_v10  ;;  %v1973_v22 = vor.u32 %v2346_v19, %v1970_v20  ;;  %v2360_v23 = vld [vmem:[#allocation13 + $0x130] sm:$0xf0]  ;;  %v2385_v10 = vld [vmem:[#allocation14 + $0x74] sm:$0xf0]  ;;  %v533_v20 = vperm.slane %v531_v62, 0 }
 0x136   :  { %v2025_v24 = vor.u32 %v2360_v23, %v2024_v21  ;;  %v2121_v13 = vor.u32 %v2385_v10, %v2120_v5  ;;  %v2169_v23 = vor.u32 %v2397_v15, %v2168_v14  ;;  %v2088_v10 = vld [vmem:[#allocation14 + $0x30] sm:$0xf]  ;;  %v2090_v14 = vld [vmem:[#allocation14 + $0x38] sm:$0xf0] }
 0x137   :  { %v496_v33 = vmax.f32 %v492_v26, 0.0  ;;  %v1886_v26 = vld [vmem:[#allocation13 + $0x24] sm:$0xf0] }
 0x138   :  { %v452_v34 = vpop.f32.mrf.mxu2  ;;  %v1889_v28 = vor.u32 %v2325_v25, %v1886_v26  ;;  %v2178_v25 = vld [vmem:[#allocation14 + $0xe8] sm:$0xf0] }
 0x139   :  { %v498_v36 = vpack.c.bf16 %v496_v33, %v496_v33  ;;  %v453_v37 = vadd.f32 %v452_v34, %v279_v27  ;;  %v465_v38 = vpop.f32.mrf.mxu3  ;;  %v1940_v27 = vld [vmem:[#allocation13 + $0x80] sm:$0xf]  ;;  %1125 = vmatpush.bf16.msrb.mxu1 %v1973_v22  ;;  %v2013_v33 = vor.u32 %v2357_v32, %v2012_v31  ;;  %v2322_v34 = vld [vmem:[#allocation13 + $0x4] sm:$0xf]  ;;  %v2122_v32 = vld [vmem:[#allocation14 + $0x78] sm:$0xf0] }
 0x13a   :  { %v480_v42 = vpop.f32.mrf.mxu0  ;;  %v1941_v30 = vor.u32 %v2339_v29, %v1940_v27  ;;  %1111 = vmatpush.bf16.msrb.mxu0 %v1889_v28  ;;  %v2398_v22 = vld [vmem:[#allocation14 + $0xe4] sm:$0xf]  ;;  %v2160_v27 = vld [vmem:[#allocation14 + $0xc0] sm:$0xf]  ;;  %v2395_v28 = vld [vmem:[#allocation14 + $0xc4] sm:$0xf0] }
 0x13b   :  { %v466_v43 = vadd.f32 %v465_v38, %v453_v37  ;;  %v493_v44 = vpop.f32.mrf.mxu1  ;;  %718 = vmatmul.bf16.vlgmr.msrb.gmra.mxu3 %v498_v36  ;;  %744 = vmatmul.bf16.vlgmr.msra.gmra.mxu1 %v498_v36  ;;  %v1928_v36 = vld [vmem:[#allocation13 + $0x68] sm:$0xf]  ;;  %v1877_v37 = vor.u32 %v2322_v34, %v1874_v35  ;;  %v2336_v38 = vld [vmem:[#allocation13 + $0x70] sm:$0xf0]  ;;  %v2001_v42 = vor.u32 %v2354_v41, %v2000_v40  ;;  %v2381_v34 = vld [vmem:[#allocation14 + $0x54] sm:$0xf0] }
 0x13c   :  { %1144 = vmatpush.bf16.msrb.mxu3 %v2061_v49  ;;  %v1929_v39 = vor.u32 %v2336_v38, %v1928_v36  ;;  %v2333_v44 = vld [vmem:[#allocation13 + $0x58] sm:$0xf0]  ;;  %v1989_v49 = vor.u32 %v2351_v47, %v1988_v46  ;;  %v2161_v38 = vor.u32 %v2395_v28, %v2160_v27  ;;  %v2396_v40 = vld [vmem:[#allocation14 + $0xd4] sm:$0xf]  ;;  %v2114_v46 = vld [vmem:[#allocation14 + $0x68] sm:$0xf0] }
 0x13d   :  { %v495_v48 = vmax.f32 %v466_v43, 0.0  ;;  %v1916_v43 = vld [vmem:[#allocation13 + $0x50] sm:$0xf]  ;;  %1373 = vmatpush.bf16.msra.mxu1 %v2185_v2  ;;  %v2170_v41 = vld [vmem:[#allocation14 + $0xd8] sm:$0xf0] }
 0x13e   :  { %1112 = vmatpush.bf16.msrb.mxu0 %v1877_v37  ;;  %v1917_v45 = vor.u32 %v2333_v44, %v1916_v43  ;;  %v2181_v37 = vor.u32 %v2398_v22, %v2178_v25  ;;  %v2173_v47 = vor.u32 %v2396_v40, %v2170_v41  ;;  %v2098_v2 = vld [vmem:[#allocation14 + $0x48] sm:$0xf0]  ;;  %v2080_v22 = vld [vmem:[#allocation14 + $0x20] sm:$0xf]  ;;  %v2371_v41 = vld [vmem:[#allocation14 + $0x4] sm:$0xf0] }
 0x13f   :  { %v497_v50 = vpack.c.bf16 %v495_v48, %v495_v48  ;;  %v1904_v48 = vld [vmem:[#allocation13 + $0x38] sm:$0xf]  ;;  %v2101_v5 = vor.u32 %v2378_v0, %v2098_v2  ;;  %v2128_v28 = vld [vmem:[#allocation14 + $0x80] sm:$0xf] }
 0x140   :  { %v454_v51 = vpop.f32.mrf.mxu2  ;;  %1145 = vmatpush.bf16.msrb.mxu3 %v2049_v63  ;;  %v534_v63 = vperm.slane %v531_v62, 1  ;;  %v2096_v62 = vld [vmem:[#allocation14 + $0x40] sm:$0xf] }
 0x141   :  { %v467_v52 = vpop.f32.mrf.mxu3  ;;  %705 = vmatmul.bf16.vlgmr.msrb.gmra.mxu2 %v497_v50  ;;  %731 = vmatmul.bf16.vlgmr.msra.gmra.mxu0 %v497_v50  ;;  %v2330_v50 = vld [vmem:[#allocation13 + $0x40] sm:$0xf0]  ;;  %v1976_v51 = vld [vmem:[#allocation13 + $0xc8] sm:$0xf]  ;;  %v2064_v40 = vld [vmem:[#allocation14] sm:$0xf] }
 0x142   :  { %1131 = vmatpush.bf16.msrb.mxu2 %v1965_v6  ;;  %v2348_v52 = vld [vmem:[#allocation13 + $0xd0] sm:$0xf0]  ;;  %v1905_v53 = vor.u32 %v2330_v50, %v1904_v48  ;;  %1360 = vmatpush.bf16.msra.mxu0 %v2121_v13  ;;  %v2394_v48 = vld [vmem:[#allocation14 + $0xc4] sm:$0xf] }
 0x143   :  { %v1977_v56 = vor.u32 %v2348_v52, %v1976_v51  ;;  %1374 = vmatpush.bf16.msra.mxu1 %v2177_v9  ;;  %v2380_v52 = vld [vmem:[#allocation14 + $0x54] sm:$0xf] }
 0x144   :  { %1146 = vmatpush.bf16.msrb.mxu3 %v2037_v12  ;;  %v2186_v12 = vld [vmem:[#allocation14 + $0xf8] sm:$0xf0] }
 0x145   :  { %v2189_v21 = vor.u32 %v2400_v8, %v2186_v12  ;;  %v2146_v8 = vld [vmem:[#allocation14 + $0xa8] sm:$0xf0]  ;;  %v2376_v12 = vld [vmem:[#allocation14 + $0x34] sm:$0xf] }
 0x146   :  { %1132 = vmatpush.bf16.msrb.mxu2 %v1953_v18  ;;  %v2383_v18 = vld [vmem:[#allocation14 + $0x64] sm:$0xf0]  ;;  %v2093_v15 = vor.u32 %v2376_v12, %v2090_v14 }
 0x147   :  { %v2113_v26 = vor.u32 %v2383_v18, %v2112_v17  ;;  %1375 = vmatpush.bf16.msra.mxu1 %v2169_v23  ;;  %v2389_v17 = vld [vmem:[#allocation14 + $0x94] sm:$0xf0]  ;;  %v2375_v23 = vld [vmem:[#allocation14 + $0x24] sm:$0xf0] }
 0x148   :  { %1147 = vmatpush.bf16.msrb.mxu3 %v2025_v24  ;;  %v2081_v25 = vor.u32 %v2375_v23, %v2080_v22  ;;  %v2411_v22 = vld [vmem:[#allocation16 + $0x48] sm:$0xff]  ;;  %v2410_v23 = vld [vmem:[#allocation16 + $0x40] sm:$0xff] }
 0x149   :  { %1361 = vmatpush.bf16.msra.mxu0 %v2113_v26  ;;  %v2082_v26 = vld [vmem:[#allocation14 + $0x28] sm:$0xf0] }
 0x14a   :  { %1133 = vmatpush.bf16.msrb.mxu2 %v1941_v30  ;;  %v2384_v30 = vld [vmem:[#allocation14 + $0x74] sm:$0xf] }
 0x14b   :  { %1376 = vmatpush.bf16.msra.mxu1 %v2161_v38  ;;  %v2074_v38 = vld [vmem:[#allocation14 + $0x18] sm:$0xf0] }
 0x14c   :  { %1148 = vmatpush.bf16.msrb.mxu3 %v2013_v33  ;;  %v2104_v33 = vld [vmem:[#allocation14 + $0x50] sm:$0xf] }
 0x14d   :  { %v2105_v43 = vor.u32 %v2381_v34, %v2104_v33  ;;  %v2072_v34 = vld [vmem:[#allocation14 + $0x10] sm:$0xf] }
 0x14e   :  { %1134 = vmatpush.bf16.msrb.mxu2 %v1929_v39 }
 0x14f   :  { %1362 = vmatpush.bf16.msra.mxu0 %v2105_v43  ;;  %v2065_v43 = vor.u32 %v2371_v41, %v2064_v40 }
 0x150   :  { %1149 = vmatpush.bf16.msrb.mxu3 %v2001_v42  ;;  %v2125_v42 = vor.u32 %v2384_v30, %v2122_v32  ;;  %v2386_v30 = vld [vmem:[#allocation14 + $0x84] sm:$0xf]  ;;  %v2130_v32 = vld [vmem:[#allocation14 + $0x88] sm:$0xf0] }
 0x151   :  { %v2133_v33 = vor.u32 %v2386_v30, %v2130_v32 }
 0x152   :  { %1135 = vmatpush.bf16.msrb.mxu2 %v1917_v45  ;;  %v2382_v45 = vld [vmem:[#allocation14 + $0x64] sm:$0xf] }
 0x153   :  { %v2117_v51 = vor.u32 %v2382_v45, %v2114_v46 }
 0x154   :  { %1150 = vmatpush.bf16.msrb.mxu3 %v1989_v49  ;;  %v2162_v49 = vld [vmem:[#allocation14 + $0xc8] sm:$0xf0] }
 0x155   :  { %v2165_v54 = vor.u32 %v2394_v48, %v2162_v49  ;;  %v2409_v49 = vld [vmem:[#allocation16 + $0x38] sm:$0xff] }
 0x156   :  { %1136 = vmatpush.bf16.msrb.mxu2 %v1905_v53  ;;  %v2106_v53 = vld [vmem:[#allocation14 + $0x58] sm:$0xf0] }
 0x157   :  { %v2109_v55 = vor.u32 %v2380_v52, %v2106_v53  ;;  %v2408_v53 = vld [vmem:[#allocation16 + $0x30] sm:$0xff] }
 0x158   :  { %1151 = vmatpush.bf16.msrb.mxu3 %v1977_v56  ;;  %v2152_v56 = vld [vmem:[#allocation14 + $0xb0] sm:$0xf] }
 0x15a   :  { %1137 = vmatpush.bf16.msrb.mxu2 %v1893_v57  ;;  %v2393_v57 = vld [vmem:[#allocation14 + $0xb4] sm:$0xf0] }
 0x15b   :  { %v2153_v59 = vor.u32 %v2393_v57, %v2152_v56 }
 0x15d   :  { %1377 = vmatpush.bf16.msra.mxu1 %v2153_v59  ;;  %v2407_v59 = vld [vmem:[#allocation16 + $0x28] sm:$0xff] }
 0x15e   :  { %1138 = vmatpush.bf16.msrb.mxu2 %v1881_v60  ;;  %v2154_v60 = vld [vmem:[#allocation14 + $0xb8] sm:$0xf0] }
 0x1b8   :  { %v745_v61 = vpop.f32.mrf.mxu1 }
 0x1be   :  { %v719_v6 = vpop.f32.mrf.mxu3  ;;  %v732_v7 = vpop.f32.mrf.mxu0 }
 0x1bf   :  { %v733_v11 = vadd.f32 %v732_v7, %v534_v63  ;;  %v2379_v63 = vld [vmem:[#allocation14 + $0x44] sm:$0xf0]  ;;  %v2390_v7 = vld [vmem:[#allocation14 + $0xa4] sm:$0xf] }
 0x1c0   :  { %v747_v16 = vpop.f32.mrf.mxu1  ;;  %v2097_v1 = vor.u32 %v2379_v63, %v2096_v62  ;;  %v2149_v9 = vor.u32 %v2390_v7, %v2146_v8 }
 0x1c1   :  { %v746_v19 = vadd.f32 %v745_v61, %v733_v11  ;;  %v2157_v61 = vor.u32 %v2392_v58, %v2154_v60  ;;  %v2377_v11 = vld [vmem:[#allocation14 + $0x34] sm:$0xf0]  ;;  %v2136_v16 = vld [vmem:[#allocation14 + $0x90] sm:$0xf]  ;;  %v2415_v60 = vld [vmem:[#allocation16 + $0x68] sm:$0xff] }
 0x1c2   :  { %1363 = vmatpush.bf16.msra.mxu0 %v2097_v1  ;;  %v2089_v13 = vor.u32 %v2377_v11, %v2088_v10  ;;  %v2137_v18 = vor.u32 %v2389_v17, %v2136_v16  ;;  %v2414_v16 = vld [vmem:[#allocation16 + $0x60] sm:$0xff]  ;;  %v2404_v17 = vld [vmem:[#allocation16 + $0x10] sm:$0xff] }
 0x1c3   :  { %v750_v24 = vpack.c.bf16 %v746_v19, %v746_v19  ;;  %v2388_v19 = vld [vmem:[#allocation14 + $0x94] sm:$0xf] }
 0x1c4   :  { %v706_v29 = vpop.f32.mrf.mxu2 }
 0x1c5   :  { %v707_v31 = vadd.f32 %v706_v29, %v533_v20  ;;  %1100 = vmatmul.bf16.vlgmr.msra.gmra.mxu3 %v750_v24  ;;  %1126 = vmatmul.bf16.vlgmr.msrb.gmra.mxu1 %v750_v24  ;;  %v2138_v20 = vld [vmem:[#allocation14 + $0x98] sm:$0xf0]  ;;  %v2387_v29 = vld [vmem:[#allocation14 + $0x84] sm:$0xf0] }
 0x1c6   :  { %v721_v35 = vpop.f32.mrf.mxu3  ;;  %v734_v36 = vpop.f32.mrf.mxu0  ;;  %1399 = vmatpush.bf16.msra.mxu3 %v2189_v21  ;;  %1364 = vmatpush.bf16.msra.mxu0 %v2089_v13  ;;  %v2141_v21 = vor.u32 %v2388_v19, %v2138_v20  ;;  %v2403_v19 = vld [vmem:[#allocation16 + $0x8] sm:$0xff]  ;;  %v2412_v20 = vld [vmem:[#allocation16 + $0x50] sm:$0xff] }
 0x1c7   :  { %v720_v39 = vadd.f32 %v719_v6, %v707_v31  ;;  %v2145_v6 = vor.u32 %v2391_v4, %v2144_v3  ;;  %v2129_v31 = vor.u32 %v2387_v29, %v2128_v28  ;;  %v2373_v35 = vld [vmem:[#allocation14 + $0x14] sm:$0xf0]  ;;  %v2406_v3 = vld [vmem:[#allocation16 + $0x20] sm:$0xff] }
 0x1c8   :  { %v2073_v36 = vor.u32 %v2373_v35, %v2072_v34 }
 0x1c9   :  { %v749_v44 = vpack.c.bf16 %v720_v39, %v720_v39  ;;  %1378 = vmatpush.bf16.msra.mxu1 %v2145_v6 }
 0x1ca   :  { %1400 = vmatpush.bf16.msra.mxu3 %v2181_v37  ;;  %1365 = vmatpush.bf16.msra.mxu0 %v2081_v25  ;;  %v2372_v37 = vld [vmem:[#allocation14 + $0x14] sm:$0xf]  ;;  %v1194_v25 = vld [vmem:[%s2839_s10] sm:$0x3] }
 0x1cb   :  { %1087 = vmatmul.bf16.vlgmr.msra.gmra.mxu2 %v749_v44  ;;  %1113 = vmatmul.bf16.vlgmr.msrb.gmra.mxu0 %v749_v44  ;;  %v2077_v39 = vor.u32 %v2372_v37, %v2074_v38  ;;  %v1197_v32 = vperm.slane %v1194_v25, 1 }
 0x1cc   :  { %v708_v50 = vpop.f32.mrf.mxu2  ;;  %1386 = vmatpush.bf16.msra.mxu2 %v2125_v42  ;;  %v2370_v42 = vld [vmem:[#allocation14 + $0x4] sm:$0xf] }
 0x1cd   :  { %1379 = vmatpush.bf16.msra.mxu1 %v2137_v18  ;;  %v2417_v50 = vld [vmem:[#allocation16 + $0x78] sm:$0xff] }
 0x1ce   :  { %1401 = vmatpush.bf16.msra.mxu3 %v2173_v47  ;;  %1366 = vmatpush.bf16.msra.mxu0 %v2073_v36  ;;  %v815_v47 = vld [vmem:[%s2837_s8] sm:$0x7] }
 0x1cf   :  { %v818_v48 = vperm.slane %v815_v47, 1  ;;  %v817_v58 = vperm.slane %v815_v47, 0  ;;  %v2413_v18 = vld [vmem:[#allocation16 + $0x58] sm:$0xff] }
 0x1d0   :  { %1387 = vmatpush.bf16.msra.mxu2 %v2117_v51 }
 0x1d1   :  { %1380 = vmatpush.bf16.msra.mxu1 %v2129_v31 }
 0x1d2   :  { %1402 = vmatpush.bf16.msra.mxu3 %v2165_v54  ;;  %1367 = vmatpush.bf16.msra.mxu0 %v2065_v43  ;;  %v2416_v54 = vld [vmem:[#allocation16 + $0x70] sm:$0xff] }
 0x1d4   :  { %1388 = vmatpush.bf16.msra.mxu2 %v2109_v55 }
 0x1d5   :  { %1152 = vmatmul.bf16.vlgmr.msrb.gmra.mxu3 %v750_v24  ;;  %v2374_v24 = vld [vmem:[#allocation14 + $0x24] sm:$0xf]  ;;  %1561 = vmatpush.bf16.msrb.mxu1 %v2417_v50 }
 0x1d6   :  { %1403 = vmatpush.bf16.msra.mxu3 %v2157_v61  ;;  %v2085_v27 = vor.u32 %v2374_v24, %v2082_v26  ;;  %1548 = vmatpush.bf16.msrb.mxu0 %v2409_v49  ;;  %v1196_v26 = vperm.slane %v1194_v25, 0 }
 0x1d8   :  { %1389 = vmatpush.bf16.msra.mxu2 %v2101_v5 }
 0x1d9   :  { %1562 = vmatpush.bf16.msrb.mxu1 %v2416_v54 }
 0x1da   :  { %1404 = vmatpush.bf16.msra.mxu3 %v2149_v9  ;;  %1549 = vmatpush.bf16.msrb.mxu0 %v2408_v53  ;;  %v819_v9 = vperm.slane %v815_v47, 2 }
 0x1db   :  { %1139 = vmatmul.bf16.vlgmr.msrb.gmra.mxu2 %v749_v44  ;;  %v2066_v44 = vld [vmem:[#allocation14 + $0x8] sm:$0xf0] }
 0x1dc   :  { %1390 = vmatpush.bf16.msra.mxu2 %v2093_v15  ;;  %v2069_v45 = vor.u32 %v2370_v42, %v2066_v44  ;;  %v2405_v15 = vld [vmem:[#allocation16 + $0x18] sm:$0xff] }
 0x1dd   :  { %1563 = vmatpush.bf16.msrb.mxu1 %v2415_v60  ;;  %v2434_v44 = vld [vmem:[%s2841_s12] ss:$0 sm:$0xff] }
 0x1de   :  { %1405 = vmatpush.bf16.msra.mxu3 %v2141_v21  ;;  %1550 = vmatpush.bf16.msrb.mxu0 %v2407_v59  ;;  %v2402_v21 = vld [vmem:[#allocation16] sm:$0xff] }
 0x1e0   :  { %1391 = vmatpush.bf16.msra.mxu2 %v2085_v27 }
 0x1e1   :  { %1564 = vmatpush.bf16.msrb.mxu1 %v2414_v16 }
 0x1e2   :  { %1406 = vmatpush.bf16.msra.mxu3 %v2133_v33  ;;  %1551 = vmatpush.bf16.msrb.mxu0 %v2406_v3 }
 0x1e4   :  { %1392 = vmatpush.bf16.msra.mxu2 %v2077_v39 }
 0x1e5   :  { %1565 = vmatpush.bf16.msrb.mxu1 %v2413_v18 }
 0x1e6   :  { %1552 = vmatpush.bf16.msrb.mxu0 %v2405_v15 }
 0x1e8   :  { %1393 = vmatpush.bf16.msra.mxu2 %v2069_v45 }
 0x1e9   :  { %1566 = vmatpush.bf16.msrb.mxu1 %v2412_v20 }
 0x1ea   :  { %1553 = vmatpush.bf16.msrb.mxu0 %v2404_v17 }
 0x1ed   :  { %1567 = vmatpush.bf16.msrb.mxu1 %v2411_v22 }
 0x1ee   :  { %1554 = vmatpush.bf16.msrb.mxu0 %v2403_v19 }
 0x1f1   :  { %1568 = vmatpush.bf16.msrb.mxu1 %v2410_v23 }
 0x1f2   :  { %1555 = vmatpush.bf16.msrb.mxu0 %v2402_v21 }
 0x242   :  { %v1127_v46 = vpop.f32.mrf.mxu1 }
 0x248   :  { %v1101_v51 = vpop.f32.mrf.mxu3  ;;  %v1114_v52 = vpop.f32.mrf.mxu0 }
 0x249   :  { %v1115_v55 = vadd.f32 %v1114_v52, %v818_v48 }
 0x24a   :  { %v1129_v56 = vpop.f32.mrf.mxu1 }
 0x24b   :  { %v1128_v57 = vadd.f32 %v1127_v46, %v1115_v55 }
 0x24d   :  { %v1158_v61 = vmax.f32 %v1128_v57, 0.0 }
 0x24e   :  { %v1088_v62 = vpop.f32.mrf.mxu2 }
 0x24f   :  { %v1160_v63 = vpack.c.bf16 %v1158_v61, %v1158_v61  ;;  %v1089_v0 = vadd.f32 %v1088_v62, %v817_v58 }
 0x250   :  { %v1103_v1 = vpop.f32.mrf.mxu3  ;;  %v1116_v2 = vpop.f32.mrf.mxu0 }
 0x251   :  { %v1102_v4 = vadd.f32 %v1101_v51, %v1089_v0  ;;  %1381 = vmatmul.bf16.vlgmr.msra.gmra.mxu1 %v1160_v63  ;;  %1407 = vmatmul.bf16.vlgmr.msra.gmra.mxu3 %v1160_v63 }
 0x253   :  { %v1157_v5 = vmax.f32 %v1102_v4, 0.0 }
 0x255   :  { %v1159_v6 = vpack.c.bf16 %v1157_v5, %v1157_v5 }
 0x256   :  { %v1090_v7 = vpop.f32.mrf.mxu2 }
 0x257   :  { %1368 = vmatmul.bf16.vlgmr.msra.gmra.mxu0 %v1159_v6  ;;  %1394 = vmatmul.bf16.vlgmr.msra.gmra.mxu2 %v1159_v6 }
 0x258   :  { %v1153_v8 = vpop.f32.mrf.mxu3 }
 0x25e   :  { %v1140_v10 = vpop.f32.mrf.mxu2 }
 0x25f   :  { %v1141_v11 = vadd.f32 %v1140_v10, %v819_v9 }
 0x260   :  { %v1155_v12 = vpop.f32.mrf.mxu3 }
 0x261   :  { %v1154_v13 = vadd.f32 %v1153_v8, %v1141_v11 }
 0x263   :  { %1161 = vst [vmem:[#allocation17] sm:$0xff] %v1154_v13 }
 0x266   :  { %v1142_v14 = vpop.f32.mrf.mxu2 }
 0x2ce   :  { %v1382_v24 = vpop.f32.mrf.mxu1 }
 0x2d4   :  { %v1369_v27 = vpop.f32.mrf.mxu0  ;;  %v1408_v28 = vpop.f32.mrf.mxu3 }
 0x2d5   :  { %v1370_v29 = vadd.f32 %v1369_v27, %v1196_v26 }
 0x2d6   :  { %v1384_v30 = vpop.f32.mrf.mxu1 }
 0x2d7   :  { %v1383_v31 = vadd.f32 %v1382_v24, %v1370_v29 }
 0x2d9   :  { %v1412_v33 = vmax.f32 %v1383_v31, 0.0 }
 0x2da   :  { %v1395_v34 = vpop.f32.mrf.mxu2 }
 0x2db   :  { %v1414_v35 = vpack.c.bf16 %v1412_v33, %v1412_v33  ;;  %v1396_v36 = vadd.f32 %v1395_v34, %v1197_v32 }
 0x2dc   :  { %v1371_v37 = vpop.f32.mrf.mxu0  ;;  %v1410_v38 = vpop.f32.mrf.mxu3 }
 0x2dd   :  { %v1409_v39 = vadd.f32 %v1408_v28, %v1396_v36  ;;  %1556 = vmatmul.bf16.vlgmr.msrb.gmra.mxu0 %v1414_v35 }
 0x2df   :  { %v1413_v40 = vmax.f32 %v1409_v39, 0.0 }
 0x2e1   :  { %v1415_v41 = vpack.c.bf16 %v1413_v40, %v1413_v40 }
 0x2e2   :  { %v1397_v42 = vpop.f32.mrf.mxu2 }
 0x2e3   :  { %1569 = vmatmul.bf16.vlgmr.msrb.gmra.mxu1 %v1415_v41 }
 0x35a   :  { %v1557_v43 = vpop.f32.mrf.mxu0 }
 0x35b   :  { %v1558_v45 = vadd.f32 %v2434_v44, %v1557_v43 }
 0x360   :  { %v1570_v46 = vpop.f32.mrf.mxu1 }
 0x361   :  { %v1571_v47 = vadd.f32 %v1570_v46, %v1558_v45 }
 0x362   :  { %v1559_v48 = vpop.f32.mrf.mxu0 }
 0x363   :  { %1574 = vst [vmem:[#allocation17 + $0x8] sm:$0xff] %v1571_v47 }
 0x364   :  { %1585 = dma.vmem_to_hbm [thread:$0]  %s1581_s20, 256, %s1583_s0, [#allocation4]  }
 0x368   :  { %v1572_v49 = vpop.f32.mrf.mxu1 }
 0x369   :  { %2685 = dma.done.wait [#allocation4], 256  }
 0x36a   :  { %2686 = vsyncadd [#allocation4], 4294967040 }
 0x36b   :  { %1590 = vsyncpa [#allocation3], 1 }
 0x36c   :  { %1591 = vsyncpa [#allocation6], 1 }
 0x36d   :  { %1592 = vsyncpa [#allocation9], 1 }
 0x36e   :  { %1593 = vsyncpa [#allocation12], 1 }
 0x36f   :  { %1594 = vsyncpa [#allocation15], 1 }
 0x370   :  { %1595 = vsyncpa [#allocation4], 1 }

</bundles_post_ra>
